<compile_context>
chip_gen: v7x
topology: tpu7x:2x2x1
jax: 0.10.0
libtpu: 0.0.40
codegen_flags: <defaults>
</compile_context>

<pallas_src>
import functools

import jax
import jax.numpy as jnp
from jax import lax
from jax.experimental import pallas as pl
from jax.experimental.pallas import tpu as pltpu


def _round_up(x, m):
    return ((x + m - 1) // m) * m


def a3tgcn2_kernel(probs_ref, a_ref, x_ref, h_ref,
                   weff_ref, whside_ref, whr_ref, bias_ref,
                   out_ref, hside_ref, *, bblk, f_in, c_pad, pt):
    pi = pl.program_id(1)                 # period-block index ("arbitrary" axis)
    rows = out_ref.shape[0]               # Bblk * N

    Hblk = h_ref[...]                     # (rows, Cp)   hidden state (fixed across periods)
    A = a_ref[...]                        # (N, N)       normalized adjacency

    # Period-invariant work, done once per batch block:
    #   hside = H @ [Wz_right | Wr_right | 0] + [bias_z | bias_r | bias_h]
    # (biases already include bconv @ Wlin_left + blin, folded in the wrapper).
    @pl.when(pi == 0)
    def _init():
        hside_ref[...] = (jnp.dot(Hblk, whside_ref[...],
                                  preferred_element_type=jnp.float32)
                          + bias_ref[...])
        out_ref[...] = jnp.zeros_like(out_ref)

    hside = hside_ref[...]                # (rows, 3*Cp)
    weff = weff_ref[...]                  # (F_in, 3*Cp)  = Wconv_g @ Wlin_g_left, packed
    whr = whr_ref[...]                    # (Cp, Cp)      = Wlin_h_right

    def step(t, acc):
        Xp = x_ref[t]                                            # (N, Bblk*F_in)
        # Single adjacency matmul per period, batch folded into lanes.
        AX = jnp.dot(A, Xp, preferred_element_type=jnp.float32)  # (N, Bblk*F_in)
        # Fold batch into rows (batch-major within the block) for the wide gate matmul.
        parts = [AX[:, b * f_in:(b + 1) * f_in] for b in range(bblk)]
        AXf = parts[0] if bblk == 1 else jnp.concatenate(parts, axis=0)  # (rows, F_in)

        # One wide matmul produces all three gate pre-activations.
        Pre = (jnp.dot(AXf, weff, preferred_element_type=jnp.float32)
               + hside)                                          # (rows, 3*Cp)

        Z = jax.nn.sigmoid(Pre[:, :c_pad])                       # update gate
        R = jax.nn.sigmoid(Pre[:, c_pad:2 * c_pad])              # reset gate
        cand = Pre[:, 2 * c_pad:] + jnp.dot(Hblk * R, whr,
                                            preferred_element_type=jnp.float32)
        Ht = jnp.tanh(cand)                                      # candidate state
        Hout = Z * Hblk + (1.0 - Z) * Ht                         # TGCN2 output

        prob = probs_ref[pi * pt + t]                            # attention weight
        return acc + prob * Hout

    acc = lax.fori_loop(0, pt, step,
                        jnp.zeros((rows, c_pad), jnp.float32),
                        unroll=True)
    out_ref[...] += acc


def gcn_norm_dense(edge_index, edge_weight, num_nodes, improved=False):
    """Dense A_hat = D^{-1/2} (A + fill*I) D^{-1/2}, matching torch_geometric gcn_norm."""
    fill = 2.0 if improved else 1.0
    E = edge_index.shape[1]
    if edge_weight is None:
        edge_weight = jnp.ones((E,), jnp.float32)
    loops = jnp.arange(num_nodes)
    row = jnp.concatenate([edge_index[0], loops])
    col = jnp.concatenate([edge_index[1], loops])
    w = jnp.concatenate([edge_weight, jnp.full((num_nodes,), fill, jnp.float32)])
    deg = jnp.zeros((num_nodes,), jnp.float32).at[col].add(w)
    dinv = jnp.where(deg > 0, 1.0 / jnp.sqrt(deg), 0.0)
    norm = dinv[row] * w * dinv[col]
    # out[target] += norm * x[source]  =>  A_hat[target, source] = norm
    return jnp.zeros((num_nodes, num_nodes), jnp.float32).at[col, row].add(norm)


def a3tgcn2_forward(X, edge_index, edge_weight, params, H=None,
                    *, batch_block=None, period_block=None):
    """X: (B, N, F_in, P). Returns H_accum: (B, N, C)."""
    B, N, F_in, P = X.shape
    C = params['wconv'].shape[-1]
    if H is None:
        H = jnp.zeros((B, N, C), jnp.float32)

    bblk = B if batch_block is None else batch_block
    pt = P if period_block is None else period_block
    assert B % bblk == 0, "batch_block must divide batch size"
    assert P % pt == 0, "period_block must divide number of periods"
    nbb = B // bblk                              # batch blocks ("parallel" grid axis)
    pb = P // pt                                 # period blocks ("arbitrary" grid axis)
    cp = _round_up(C, 128)                       # lane-pad channels to a full vreg width

    A_hat = gcn_norm_dense(edge_index, edge_weight, N).astype(jnp.float32)
    probs = jax.nn.softmax(params['attention']).astype(jnp.float32)

    # X: (B,N,F,P) -> (nbb, P, N, bblk*F_in); lanes ordered (batch-within-block, feature).
    Xk = jnp.transpose(X.astype(jnp.float32), (3, 1, 0, 2))            # (P, N, B, F)
    Xk = Xk.reshape(P, N, nbb, bblk, F_in).transpose(2, 0, 1, 3, 4)    # (nbb,P,N,bblk,F)
    Xk = Xk.reshape(nbb, P, N, bblk * F_in)

    # H: (B,N,C) -> (nbb, bblk*N, Cp); rows batch-major within a block, lane-padded.
    Hk = H.astype(jnp.float32).reshape(nbb, bblk * N, C)
    Hk = jnp.pad(Hk, ((0, 0), (0, 0), (0, cp - C)))

    wconv, bconv = params['wconv'], params['bconv']
    wlin, blin = params['wlin'], params['blin']

    # Packed / folded / lane-padded weights (zero in padded lanes).
    w_eff = jnp.zeros((F_in, 3 * cp), jnp.float32)     # Wconv_g @ Wlin_g_left
    w_hside = jnp.zeros((cp, 3 * cp), jnp.float32)     # [Wz_right | Wr_right | 0]
    w_hr = jnp.zeros((cp, cp), jnp.float32)            # Wh_right
    bias = jnp.zeros((1, 3 * cp), jnp.float32)         # bconv_g @ Wlin_g_left + blin_g
    for g in range(3):
        wl_left = wlin[g, :C, :]                                       # (C, C)
        w_eff = w_eff.at[:, g * cp:g * cp + C].set(wconv[g] @ wl_left)
        bias = bias.at[:, g * cp:g * cp + C].set(bconv[g] @ wl_left + blin[g])
    for g in range(2):                                                 # z, r H-side
        w_hside = w_hside.at[:C, g * cp:g * cp + C].set(wlin[g, C:, :])
    w_hr = w_hr.at[:C, :C].set(wlin[2, C:, :])

    kernel = functools.partial(a3tgcn2_kernel, bblk=bblk, f_in=F_in,
                               c_pad=cp, pt=pt)

    out = pl.pallas_call(
        kernel,
        out_shape=jax.ShapeDtypeStruct((nbb, bblk * N, cp), jnp.float32),
        grid=(nbb, pb),
        in_specs=[
            pl.BlockSpec(memory_space=pltpu.MemorySpace.SMEM),                     # probs (P,)
            pl.BlockSpec((N, N), lambda bi, pi: (0, 0)),                           # A_hat
            pl.BlockSpec((pl.Squeezed(), pt, N, bblk * F_in),
                         lambda bi, pi: (bi, pi, 0, 0)),                           # X block
            pl.BlockSpec((pl.Squeezed(), bblk * N, cp),
                         lambda bi, pi: (bi, 0, 0)),                               # H block
            pl.BlockSpec((F_in, 3 * cp), lambda bi, pi: (0, 0)),                   # w_eff
            pl.BlockSpec((cp, 3 * cp), lambda bi, pi: (0, 0)),                     # w_hside
            pl.BlockSpec((cp, cp), lambda bi, pi: (0, 0)),                         # w_hr
            pl.BlockSpec((1, 3 * cp), lambda bi, pi: (0, 0)),                      # bias
        ],
        out_specs=pl.BlockSpec((pl.Squeezed(), bblk * N, cp),
                               lambda bi, pi: (bi, 0, 0)),                         # accumulator
        scratch_shapes=[pltpu.VMEM((bblk * N, 3 * cp), jnp.float32)],              # hside
        compiler_params=pltpu.CompilerParams(
            dimension_semantics=("parallel", "arbitrary")),
    )(probs, A_hat, Xk, Hk, w_eff, w_hside, w_hr, bias)

    # Strip channel padding and restore (B, N, C).
    return out[:, :, :C].reshape(B, N, C)


def a3tgcn2_ref(X, edge_index, edge_weight, params, H=None):
    """Pure-JAX reference mirroring the PyTorch forward for validation."""
    B, N, F_in, P = X.shape
    C = params['wconv'].shape[-1]
    if H is None:
        H = jnp.zeros((B, N, C), jnp.float32)
    A_hat = gcn_norm_dense(edge_index, edge_weight, N)
    probs = jax.nn.softmax(params['attention'])
    acc = jnp.zeros((B, N, C), jnp.float32)
    for p in range(P):
        Xp = X[..., p]

        def gcn(g):
            return (jnp.einsum('nm,bmf,fc->bnc', A_hat, Xp, params['wconv'][g])
                    + params['bconv'][g])

        def lin(g, left, right):
            w = params['wlin'][g]
            return left @ w[:C] + right @ w[C:] + params['blin'][g]

        Z = jax.nn.sigmoid(lin(0, gcn(0), H))
        R = jax.nn.sigmoid(lin(1, gcn(1), H))
        Ht = jnp.tanh(lin(2, gcn(2), H * R))
        acc = acc + probs[p] * (Z * H + (1.0 - Z) * Ht)
    return acc


if __name__ == "__main__":
    # batch, nodes, in_channels, out_channels, periods
    B, N, F_in, C, P = 4, 16, 4, 32, 8

    key = jax.random.PRNGKey(0)
    k_x, k_wc, k_bc, k_wl, k_bl, k_att = jax.random.split(key, 6)

    X = jax.random.normal(k_x, (B, N, F_in, P), jnp.float32)

    # Simple bidirectional ring graph, unweighted (edge_weight=None path).
    src = jnp.arange(N, dtype=jnp.int32)
    dst = (src + 1) % N
    edge_index = jnp.stack([jnp.concatenate([src, dst]),
                            jnp.concatenate([dst, src])])

    # Deterministic synthetic parameters (shapes follow TGCN2/A3TGCN2 __init__):
    #  3 GCNConv layers (z, r, h): weight (F_in, C), bias (C,)
    #  3 Linear(2C, C) layers:     weight (2C, C) [transposed torch layout], bias (C,)
    #  attention: (P,)
    params = {
        'wconv':     0.1 * jax.random.normal(k_wc, (3, F_in, C), jnp.float32),
        'bconv':     0.1 * jax.random.normal(k_bc, (3, 1, C), jnp.float32),
        'wlin':      0.1 * jax.random.normal(k_wl, (3, 2 * C, C), jnp.float32),
        'blin':      0.1 * jax.random.normal(k_bl, (3, 1, C), jnp.float32),
        'attention': jax.random.uniform(k_att, (P,), jnp.float32),
    }

    # grid = (2 batch blocks ["parallel"], 2 period blocks ["arbitrary"]);
    # each period block processes 4 periods in an unrolled in-kernel loop.
    out = a3tgcn2_forward(X, edge_index, None, params,
                          batch_block=2, period_block=4)
    jax.block_until_ready(out)

    ref = a3tgcn2_ref(X, edge_index, None, params)
    assert out.shape == (B, N, C)
    assert jnp.allclose(out, ref, atol=1e-4, rtol=1e-4), \
        f"max abs err = {jnp.max(jnp.abs(out - ref))}"

    print("KERNEL_OK")
</pallas_src>

<mosaic_0001>
module attributes {stable_mosaic.version = 11 : i64} {
  func.func @a3tgcn2_kernel(%arg0: i32, %arg1: i32, %arg2: memref<8xf32, #tpu.memory_space<smem>>, %arg3: memref<16x16xf32, #tpu.memory_space<vmem>>, %arg4: memref<1x4x16x8xf32, #tpu.memory_space<vmem>>, %arg5: memref<1x32x128xf32, #tpu.memory_space<vmem>>, %arg6: memref<4x384xf32, #tpu.memory_space<vmem>>, %arg7: memref<128x384xf32, #tpu.memory_space<vmem>>, %arg8: memref<128x128xf32, #tpu.memory_space<vmem>>, %arg9: memref<1x384xf32, #tpu.memory_space<vmem>>, %arg10: memref<1x32x128xf32, #tpu.memory_space<vmem>>, %arg11: memref<32x384xf32, #tpu.memory_space<vmem>>) attributes {dimension_semantics = [#tpu.dimension_semantics<parallel>, #tpu.dimension_semantics<arbitrary>], iteration_bounds = array<i64: 2, 2>, scalar_prefetch = 0 : i64, scratch_operands = 1 : i64, tpu.core_type = #tpu.core_type<tc>, window_params = [{transform_indices = @transform_0, window_bounds = array<i64: 8>}, {pipeline_mode = #tpu.pipeline_mode<synchronous>, transform_indices = @transform_1, window_bounds = array<i64: 16, 16>}, {transform_indices = @transform_2, window_bounds = array<i64: 1, 4, 16, 8>}, {transform_indices = @transform_3, window_bounds = array<i64: 1, 32, 128>}, {pipeline_mode = #tpu.pipeline_mode<synchronous>, transform_indices = @transform_4, window_bounds = array<i64: 4, 384>}, {pipeline_mode = #tpu.pipeline_mode<synchronous>, transform_indices = @transform_5, window_bounds = array<i64: 128, 384>}, {pipeline_mode = #tpu.pipeline_mode<synchronous>, transform_indices = @transform_6, window_bounds = array<i64: 128, 128>}, {pipeline_mode = #tpu.pipeline_mode<synchronous>, transform_indices = @transform_7, window_bounds = array<i64: 1, 384>}, {transform_indices = @transform_8, window_bounds = array<i64: 1, 32, 128>}]} {
    %c0 = arith.constant 0 : index
    %c0_0 = arith.constant 0 : index
    %c0_1 = arith.constant 0 : index
    %0 = vector.load %arg5[%c0, %c0_0, %c0_1] : memref<1x32x128xf32, #tpu.memory_space<vmem>>, vector<1x32x128xf32>
    %1 = vector.shape_cast %0 : vector<1x32x128xf32> to vector<32x128xf32>
    %c0_2 = arith.constant 0 : index
    %c0_3 = arith.constant 0 : index
    %2 = vector.load %arg3[%c0_2, %c0_3] : memref<16x16xf32, #tpu.memory_space<vmem>>, vector<16x16xf32>
    %c0_i32 = arith.constant 0 : i32
    %3 = arith.cmpi eq, %arg1, %c0_i32 : i32
    %4 = arith.extui %3 : i1 to i32
    %c0_i32_4 = arith.constant 0 : i32
    %5 = arith.cmpi ne, %4, %c0_i32_4 : i32
    scf.if %5 {
      %c0_58 = arith.constant 0 : index
      %c0_59 = arith.constant 0 : index
      %168 = vector.load %arg7[%c0_58, %c0_59] : memref<128x384xf32, #tpu.memory_space<vmem>>, vector<128x384xf32>
      %cst_60 = arith.constant dense<0.000000e+00> : vector<32x384xf32>
      %169 = tpu.matmul %1, %168, %cst_60 {dimension_numbers = #tpu.dot_dimension_numbers<[1], [0], [0], [1], [0, 0, 1, 1], [], []>} : vector<32x128xf32>, vector<128x384xf32>, vector<32x384xf32> -> vector<32x384xf32>
      %c0_61 = arith.constant 0 : index
      %c0_62 = arith.constant 0 : index
      %170 = vector.load %arg9[%c0_61, %c0_62] : memref<1x384xf32, #tpu.memory_space<vmem>>, vector<1x384xf32>
      %171 = vector.broadcast %170 : vector<1x384xf32> to vector<32x384xf32>
      %172 = arith.addf %169, %171 : vector<32x384xf32>
      %c0_63 = arith.constant 0 : index
      %c0_64 = arith.constant 0 : index
      %173 = vector.load %arg11[%c0_63, %c0_64] : memref<32x384xf32, #tpu.memory_space<vmem>>, vector<32x384xf32>
      tpu.vector_store %arg11[%c0_63, %c0_64], %172 {strides = array<i32>} : memref<32x384xf32, #tpu.memory_space<vmem>>, vector<32x384xf32>,
      %cst_65 = arith.constant 0.000000e+00 : f32
      %174 = vector.broadcast %cst_65 : f32 to vector<32x128xf32>
      %c0_66 = arith.constant 0 : index
      %c0_67 = arith.constant 0 : index
      %c0_68 = arith.constant 0 : index
      %175 = vector.load %arg10[%c0_66, %c0_67, %c0_68] : memref<1x32x128xf32, #tpu.memory_space<vmem>>, vector<1x32x128xf32>
      %176 = vector.shape_cast %175 : vector<1x32x128xf32> to vector<32x128xf32>
      %177 = vector.shape_cast %174 : vector<32x128xf32> to vector<1x32x128xf32>
      tpu.vector_store %arg10[%c0_66, %c0_67, %c0_68], %177 {strides = array<i32>} : memref<1x32x128xf32, #tpu.memory_space<vmem>>, vector<1x32x128xf32>,
    } else {
    }
    %c0_5 = arith.constant 0 : index
    %c0_6 = arith.constant 0 : index
    %6 = vector.load %arg11[%c0_5, %c0_6] : memref<32x384xf32, #tpu.memory_space<vmem>>, vector<32x384xf32>
    %c0_7 = arith.constant 0 : index
    %c0_8 = arith.constant 0 : index
    %7 = vector.load %arg6[%c0_7, %c0_8] : memref<4x384xf32, #tpu.memory_space<vmem>>, vector<4x384xf32>
    %c0_9 = arith.constant 0 : index
    %c0_10 = arith.constant 0 : index
    %8 = vector.load %arg8[%c0_9, %c0_10] : memref<128x128xf32, #tpu.memory_space<vmem>>, vector<128x128xf32>
    %cst = arith.constant 0.000000e+00 : f32
    %9 = vector.broadcast %cst : f32 to vector<32x128xf32>
    %c0_i32_11 = arith.constant 0 : i32
    %c0_12 = arith.constant 0 : index
    %10 = arith.index_cast %c0_i32_11 : i32 to index
    %c0_13 = arith.constant 0 : index
    %c0_14 = arith.constant 0 : index
    %11 = vector.load %arg4[%c0_12, %10, %c0_13, %c0_14] : memref<1x4x16x8xf32, #tpu.memory_space<vmem>>, vector<1x1x16x8xf32>
    %12 = vector.shape_cast %11 : vector<1x1x16x8xf32> to vector<16x8xf32>
    %cst_15 = arith.constant dense<0.000000e+00> : vector<16x8xf32>
    %13 = tpu.matmul %2, %12, %cst_15 {dimension_numbers = #tpu.dot_dimension_numbers<[1], [0], [0], [1], [0, 0, 1, 1], [], []>} : vector<16x16xf32>, vector<16x8xf32>, vector<16x8xf32> -> vector<16x8xf32>
    %14 = vector.extract_strided_slice %13 {offsets = [0, 0], sizes = [16, 4], strides = [1, 1]} : vector<16x8xf32> to vector<16x4xf32>
    %15 = vector.extract_strided_slice %13 {offsets = [0, 4], sizes = [16, 4], strides = [1, 1]} : vector<16x8xf32> to vector<16x4xf32>
    %16 = tpu.concatenate %14, %15 in 0 : vector<16x4xf32>, vector<16x4xf32> -> vector<32x4xf32>
    %cst_16 = arith.constant dense<0.000000e+00> : vector<32x384xf32>
    %17 = tpu.matmul %16, %7, %cst_16 {dimension_numbers = #tpu.dot_dimension_numbers<[1], [0], [0], [1], [0, 0, 1, 1], [], []>} : vector<32x4xf32>, vector<4x384xf32>, vector<32x384xf32> -> vector<32x384xf32>
    %18 = arith.addf %17, %6 : vector<32x384xf32>
    %19 = vector.extract_strided_slice %18 {offsets = [0, 0], sizes = [32, 128], strides = [1, 1]} : vector<32x384xf32> to vector<32x128xf32>
    %20 = arith.negf %19 : vector<32x128xf32>
    %21 = math.exp %20 : vector<32x128xf32>
    %cst_17 = arith.constant 1.000000e+00 : f32
    %22 = vector.broadcast %cst_17 : f32 to vector<32x128xf32>
    %23 = arith.addf %22, %21 : vector<32x128xf32>
    %24 = arith.divf %22, %23 : vector<32x128xf32>
    %25 = vector.extract_strided_slice %18 {offsets = [0, 128], sizes = [32, 128], strides = [1, 1]} : vector<32x384xf32> to vector<32x128xf32>
    %26 = arith.negf %25 : vector<32x128xf32>
    %27 = math.exp %26 : vector<32x128xf32>
    %cst_18 = arith.constant 1.000000e+00 : f32
    %28 = vector.broadcast %cst_18 : f32 to vector<32x128xf32>
    %29 = arith.addf %28, %27 : vector<32x128xf32>
    %30 = arith.divf %28, %29 : vector<32x128xf32>
    %31 = vector.extract_strided_slice %18 {offsets = [0, 256], sizes = [32, 128], strides = [1, 1]} : vector<32x384xf32> to vector<32x128xf32>
    %32 = arith.mulf %1, %30 : vector<32x128xf32>
    %cst_19 = arith.constant dense<0.000000e+00> : vector<32x128xf32>
    %33 = tpu.matmul %32, %8, %cst_19 {dimension_numbers = #tpu.dot_dimension_numbers<[1], [0], [0], [1], [0, 0, 1, 1], [], []>} : vector<32x128xf32>, vector<128x128xf32>, vector<32x128xf32> -> vector<32x128xf32>
    %34 = arith.addf %31, %33 : vector<32x128xf32>
    %35 = math.tanh %34 : vector<32x128xf32>
    %36 = arith.mulf %24, %1 : vector<32x128xf32>
    %cst_20 = arith.constant 1.000000e+00 : f32
    %37 = vector.broadcast %cst_20 : f32 to vector<32x128xf32>
    %38 = arith.subf %37, %24 : vector<32x128xf32>
    %39 = arith.mulf %38, %35 : vector<32x128xf32>
    %40 = arith.addf %36, %39 : vector<32x128xf32>
    %c4_i32 = arith.constant 4 : i32
    %41 = arith.muli %arg1, %c4_i32 : i32
    %42 = arith.addi %41, %c0_i32_11 : i32
    %43 = arith.index_cast %42 : i32 to index
    %44 = memref.load %arg2[%43] : memref<8xf32, #tpu.memory_space<smem>>
    %45 = vector.broadcast %44 : f32 to vector<32x128xf32>
    %46 = arith.mulf %45, %40 : vector<32x128xf32>
    %47 = arith.addf %9, %46 : vector<32x128xf32>
    %c1_i32 = arith.constant 1 : i32
    %c0_21 = arith.constant 0 : index
    %48 = arith.index_cast %c1_i32 : i32 to index
    %c0_22 = arith.constant 0 : index
    %c0_23 = arith.constant 0 : index
    %49 = vector.load %arg4[%c0_21, %48, %c0_22, %c0_23] : memref<1x4x16x8xf32, #tpu.memory_space<vmem>>, vector<1x1x16x8xf32>
    %50 = vector.shape_cast %49 : vector<1x1x16x8xf32> to vector<16x8xf32>
    %cst_24 = arith.constant dense<0.000000e+00> : vector<16x8xf32>
    %51 = tpu.matmul %2, %50, %cst_24 {dimension_numbers = #tpu.dot_dimension_numbers<[1], [0], [0], [1], [0, 0, 1, 1], [], []>} : vector<16x16xf32>, vector<16x8xf32>, vector<16x8xf32> -> vector<16x8xf32>
    %52 = vector.extract_strided_slice %51 {offsets = [0, 0], sizes = [16, 4], strides = [1, 1]} : vector<16x8xf32> to vector<16x4xf32>
    %53 = vector.extract_strided_slice %51 {offsets = [0, 4], sizes = [16, 4], strides = [1, 1]} : vector<16x8xf32> to vector<16x4xf32>
    %54 = tpu.concatenate %52, %53 in 0 : vector<16x4xf32>, vector<16x4xf32> -> vector<32x4xf32>
    %cst_25 = arith.constant dense<0.000000e+00> : vector<32x384xf32>
    %55 = tpu.matmul %54, %7, %cst_25 {dimension_numbers = #tpu.dot_dimension_numbers<[1], [0], [0], [1], [0, 0, 1, 1], [], []>} : vector<32x4xf32>, vector<4x384xf32>, vector<32x384xf32> -> vector<32x384xf32>
    %56 = arith.addf %55, %6 : vector<32x384xf32>
    %57 = vector.extract_strided_slice %56 {offsets = [0, 0], sizes = [32, 128], strides = [1, 1]} : vector<32x384xf32> to vector<32x128xf32>
    %58 = arith.negf %57 : vector<32x128xf32>
    %59 = math.exp %58 : vector<32x128xf32>
    %cst_26 = arith.constant 1.000000e+00 : f32
    %60 = vector.broadcast %cst_26 : f32 to vector<32x128xf32>
    %61 = arith.addf %60, %59 : vector<32x128xf32>
    %62 = arith.divf %60, %61 : vector<32x128xf32>
    %63 = vector.extract_strided_slice %56 {offsets = [0, 128], sizes = [32, 128], strides = [1, 1]} : vector<32x384xf32> to vector<32x128xf32>
    %64 = arith.negf %63 : vector<32x128xf32>
    %65 = math.exp %64 : vector<32x128xf32>
    %cst_27 = arith.constant 1.000000e+00 : f32
    %66 = vector.broadcast %cst_27 : f32 to vector<32x128xf32>
    %67 = arith.addf %66, %65 : vector<32x128xf32>
    %68 = arith.divf %66, %67 : vector<32x128xf32>
    %69 = vector.extract_strided_slice %56 {offsets = [0, 256], sizes = [32, 128], strides = [1, 1]} : vector<32x384xf32> to vector<32x128xf32>
    %70 = arith.mulf %1, %68 : vector<32x128xf32>
    %cst_28 = arith.constant dense<0.000000e+00> : vector<32x128xf32>
    %71 = tpu.matmul %70, %8, %cst_28 {dimension_numbers = #tpu.dot_dimension_numbers<[1], [0], [0], [1], [0, 0, 1, 1], [], []>} : vector<32x128xf32>, vector<128x128xf32>, vector<32x128xf32> -> vector<32x128xf32>
    %72 = arith.addf %69, %71 : vector<32x128xf32>
    %73 = math.tanh %72 : vector<32x128xf32>
    %74 = arith.mulf %62, %1 : vector<32x128xf32>
    %cst_29 = arith.constant 1.000000e+00 : f32
    %75 = vector.broadcast %cst_29 : f32 to vector<32x128xf32>
    %76 = arith.subf %75, %62 : vector<32x128xf32>
    %77 = arith.mulf %76, %73 : vector<32x128xf32>
    %78 = arith.addf %74, %77 : vector<32x128xf32>
    %c4_i32_30 = arith.constant 4 : i32
    %79 = arith.muli %arg1, %c4_i32_30 : i32
    %80 = arith.addi %79, %c1_i32 : i32
    %81 = arith.index_cast %80 : i32 to index
    %82 = memref.load %arg2[%81] : memref<8xf32, #tpu.memory_space<smem>>
    %83 = vector.broadcast %82 : f32 to vector<32x128xf32>
    %84 = arith.mulf %83, %78 : vector<32x128xf32>
    %85 = arith.addf %47, %84 : vector<32x128xf32>
    %c2_i32 = arith.constant 2 : i32
    %c0_31 = arith.constant 0 : index
    %86 = arith.index_cast %c2_i32 : i32 to index
    %c0_32 = arith.constant 0 : index
    %c0_33 = arith.constant 0 : index
    %87 = vector.load %arg4[%c0_31, %86, %c0_32, %c0_33] : memref<1x4x16x8xf32, #tpu.memory_space<vmem>>, vector<1x1x16x8xf32>
    %88 = vector.shape_cast %87 : vector<1x1x16x8xf32> to vector<16x8xf32>
    %cst_34 = arith.constant dense<0.000000e+00> : vector<16x8xf32>
    %89 = tpu.matmul %2, %88, %cst_34 {dimension_numbers = #tpu.dot_dimension_numbers<[1], [0], [0], [1], [0, 0, 1, 1], [], []>} : vector<16x16xf32>, vector<16x8xf32>, vector<16x8xf32> -> vector<16x8xf32>
    %90 = vector.extract_strided_slice %89 {offsets = [0, 0], sizes = [16, 4], strides = [1, 1]} : vector<16x8xf32> to vector<16x4xf32>
    %91 = vector.extract_strided_slice %89 {offsets = [0, 4], sizes = [16, 4], strides = [1, 1]} : vector<16x8xf32> to vector<16x4xf32>
    %92 = tpu.concatenate %90, %91 in 0 : vector<16x4xf32>, vector<16x4xf32> -> vector<32x4xf32>
    %cst_35 = arith.constant dense<0.000000e+00> : vector<32x384xf32>
    %93 = tpu.matmul %92, %7, %cst_35 {dimension_numbers = #tpu.dot_dimension_numbers<[1], [0], [0], [1], [0, 0, 1, 1], [], []>} : vector<32x4xf32>, vector<4x384xf32>, vector<32x384xf32> -> vector<32x384xf32>
    %94 = arith.addf %93, %6 : vector<32x384xf32>
    %95 = vector.extract_strided_slice %94 {offsets = [0, 0], sizes = [32, 128], strides = [1, 1]} : vector<32x384xf32> to vector<32x128xf32>
    %96 = arith.negf %95 : vector<32x128xf32>
    %97 = math.exp %96 : vector<32x128xf32>
    %cst_36 = arith.constant 1.000000e+00 : f32
    %98 = vector.broadcast %cst_36 : f32 to vector<32x128xf32>
    %99 = arith.addf %98, %97 : vector<32x128xf32>
    %100 = arith.divf %98, %99 : vector<32x128xf32>
    %101 = vector.extract_strided_slice %94 {offsets = [0, 128], sizes = [32, 128], strides = [1, 1]} : vector<32x384xf32> to vector<32x128xf32>
    %102 = arith.negf %101 : vector<32x128xf32>
    %103 = math.exp %102 : vector<32x128xf32>
    %cst_37 = arith.constant 1.000000e+00 : f32
    %104 = vector.broadcast %cst_37 : f32 to vector<32x128xf32>
    %105 = arith.addf %104, %103 : vector<32x128xf32>
    %106 = arith.divf %104, %105 : vector<32x128xf32>
    %107 = vector.extract_strided_slice %94 {offsets = [0, 256], sizes = [32, 128], strides = [1, 1]} : vector<32x384xf32> to vector<32x128xf32>
    %108 = arith.mulf %1, %106 : vector<32x128xf32>
    %cst_38 = arith.constant dense<0.000000e+00> : vector<32x128xf32>
    %109 = tpu.matmul %108, %8, %cst_38 {dimension_numbers = #tpu.dot_dimension_numbers<[1], [0], [0], [1], [0, 0, 1, 1], [], []>} : vector<32x128xf32>, vector<128x128xf32>, vector<32x128xf32> -> vector<32x128xf32>
    %110 = arith.addf %107, %109 : vector<32x128xf32>
    %111 = math.tanh %110 : vector<32x128xf32>
    %112 = arith.mulf %100, %1 : vector<32x128xf32>
    %cst_39 = arith.constant 1.000000e+00 : f32
    %113 = vector.broadcast %cst_39 : f32 to vector<32x128xf32>
    %114 = arith.subf %113, %100 : vector<32x128xf32>
    %115 = arith.mulf %114, %111 : vector<32x128xf32>
    %116 = arith.addf %112, %115 : vector<32x128xf32>
    %c4_i32_40 = arith.constant 4 : i32
    %117 = arith.muli %arg1, %c4_i32_40 : i32
    %118 = arith.addi %117, %c2_i32 : i32
    %119 = arith.index_cast %118 : i32 to index
    %120 = memref.load %arg2[%119] : memref<8xf32, #tpu.memory_space<smem>>
    %121 = vector.broadcast %120 : f32 to vector<32x128xf32>
    %122 = arith.mulf %121, %116 : vector<32x128xf32>
    %123 = arith.addf %85, %122 : vector<32x128xf32>
    %c3_i32 = arith.constant 3 : i32
    %c0_41 = arith.constant 0 : index
    %124 = arith.index_cast %c3_i32 : i32 to index
    %c0_42 = arith.constant 0 : index
    %c0_43 = arith.constant 0 : index
    %125 = vector.load %arg4[%c0_41, %124, %c0_42, %c0_43] : memref<1x4x16x8xf32, #tpu.memory_space<vmem>>, vector<1x1x16x8xf32>
    %126 = vector.shape_cast %125 : vector<1x1x16x8xf32> to vector<16x8xf32>
    %cst_44 = arith.constant dense<0.000000e+00> : vector<16x8xf32>
    %127 = tpu.matmul %2, %126, %cst_44 {dimension_numbers = #tpu.dot_dimension_numbers<[1], [0], [0], [1], [0, 0, 1, 1], [], []>} : vector<16x16xf32>, vector<16x8xf32>, vector<16x8xf32> -> vector<16x8xf32>
    %128 = vector.extract_strided_slice %127 {offsets = [0, 0], sizes = [16, 4], strides = [1, 1]} : vector<16x8xf32> to vector<16x4xf32>
    %129 = vector.extract_strided_slice %127 {offsets = [0, 4], sizes = [16, 4], strides = [1, 1]} : vector<16x8xf32> to vector<16x4xf32>
    %130 = tpu.concatenate %128, %129 in 0 : vector<16x4xf32>, vector<16x4xf32> -> vector<32x4xf32>
    %cst_45 = arith.constant dense<0.000000e+00> : vector<32x384xf32>
    %131 = tpu.matmul %130, %7, %cst_45 {dimension_numbers = #tpu.dot_dimension_numbers<[1], [0], [0], [1], [0, 0, 1, 1], [], []>} : vector<32x4xf32>, vector<4x384xf32>, vector<32x384xf32> -> vector<32x384xf32>
    %132 = arith.addf %131, %6 : vector<32x384xf32>
    %133 = vector.extract_strided_slice %132 {offsets = [0, 0], sizes = [32, 128], strides = [1, 1]} : vector<32x384xf32> to vector<32x128xf32>
    %134 = arith.negf %133 : vector<32x128xf32>
    %135 = math.exp %134 : vector<32x128xf32>
    %cst_46 = arith.constant 1.000000e+00 : f32
    %136 = vector.broadcast %cst_46 : f32 to vector<32x128xf32>
    %137 = arith.addf %136, %135 : vector<32x128xf32>
    %138 = arith.divf %136, %137 : vector<32x128xf32>
    %139 = vector.extract_strided_slice %132 {offsets = [0, 128], sizes = [32, 128], strides = [1, 1]} : vector<32x384xf32> to vector<32x128xf32>
    %140 = arith.negf %139 : vector<32x128xf32>
    %141 = math.exp %140 : vector<32x128xf32>
    %cst_47 = arith.constant 1.000000e+00 : f32
    %142 = vector.broadcast %cst_47 : f32 to vector<32x128xf32>
    %143 = arith.addf %142, %141 : vector<32x128xf32>
    %144 = arith.divf %142, %143 : vector<32x128xf32>
    %145 = vector.extract_strided_slice %132 {offsets = [0, 256], sizes = [32, 128], strides = [1, 1]} : vector<32x384xf32> to vector<32x128xf32>
    %146 = arith.mulf %1, %144 : vector<32x128xf32>
    %cst_48 = arith.constant dense<0.000000e+00> : vector<32x128xf32>
    %147 = tpu.matmul %146, %8, %cst_48 {dimension_numbers = #tpu.dot_dimension_numbers<[1], [0], [0], [1], [0, 0, 1, 1], [], []>} : vector<32x128xf32>, vector<128x128xf32>, vector<32x128xf32> -> vector<32x128xf32>
    %148 = arith.addf %145, %147 : vector<32x128xf32>
    %149 = math.tanh %148 : vector<32x128xf32>
    %150 = arith.mulf %138, %1 : vector<32x128xf32>
    %cst_49 = arith.constant 1.000000e+00 : f32
    %151 = vector.broadcast %cst_49 : f32 to vector<32x128xf32>
    %152 = arith.subf %151, %138 : vector<32x128xf32>
    %153 = arith.mulf %152, %149 : vector<32x128xf32>
    %154 = arith.addf %150, %153 : vector<32x128xf32>
    %c4_i32_50 = arith.constant 4 : i32
    %155 = arith.muli %arg1, %c4_i32_50 : i32
    %156 = arith.addi %155, %c3_i32 : i32
    %157 = arith.index_cast %156 : i32 to index
    %158 = memref.load %arg2[%157] : memref<8xf32, #tpu.memory_space<smem>>
    %159 = vector.broadcast %158 : f32 to vector<32x128xf32>
    %160 = arith.mulf %159, %154 : vector<32x128xf32>
    %161 = arith.addf %123, %160 : vector<32x128xf32>
    %c4_i32_51 = arith.constant 4 : i32
    %c0_52 = arith.constant 0 : index
    %c0_53 = arith.constant 0 : index
    %c0_54 = arith.constant 0 : index
    %162 = vector.load %arg10[%c0_52, %c0_53, %c0_54] : memref<1x32x128xf32, #tpu.memory_space<vmem>>, vector<1x32x128xf32>
    %163 = vector.shape_cast %162 : vector<1x32x128xf32> to vector<32x128xf32>
    %164 = arith.addf %163, %161 : vector<32x128xf32>
    %c0_55 = arith.constant 0 : index
    %c0_56 = arith.constant 0 : index
    %c0_57 = arith.constant 0 : index
    %165 = vector.load %arg10[%c0_55, %c0_56, %c0_57] : memref<1x32x128xf32, #tpu.memory_space<vmem>>, vector<1x32x128xf32>
    %166 = vector.shape_cast %165 : vector<1x32x128xf32> to vector<32x128xf32>
    %167 = vector.shape_cast %164 : vector<32x128xf32> to vector<1x32x128xf32>
    tpu.vector_store %arg10[%c0_55, %c0_56, %c0_57], %167 {strides = array<i32>} : memref<1x32x128xf32, #tpu.memory_space<vmem>>, vector<1x32x128xf32>,
    return
  }
  func.func @transform_0(%arg0: i32, %arg1: i32) -> i32 {
    %c0_i32 = arith.constant 0 : i32
    %c0_i32_0 = arith.constant 0 : i32
    return %c0_i32 : i32
  }
  func.func @transform_1(%arg0: i32, %arg1: i32) -> (i32, i32) {
    %c0_i32 = arith.constant 0 : i32
    %c0_i32_0 = arith.constant 0 : i32
    %c0_i32_1 = arith.constant 0 : i32
    return %c0_i32, %c0_i32_0 : i32, i32
  }
  func.func @transform_2(%arg0: i32, %arg1: i32) -> (i32, i32, i32, i32) {
    %c0_i32 = arith.constant 0 : i32
    %c0_i32_0 = arith.constant 0 : i32
    %c0_i32_1 = arith.constant 0 : i32
    return %arg0, %arg1, %c0_i32, %c0_i32_0 : i32, i32, i32, i32
  }
  func.func @transform_3(%arg0: i32, %arg1: i32) -> (i32, i32, i32) {
    %c0_i32 = arith.constant 0 : i32
    %c0_i32_0 = arith.constant 0 : i32
    %c0_i32_1 = arith.constant 0 : i32
    return %arg0, %c0_i32, %c0_i32_0 : i32, i32, i32
  }
  func.func @transform_4(%arg0: i32, %arg1: i32) -> (i32, i32) {
    %c0_i32 = arith.constant 0 : i32
    %c0_i32_0 = arith.constant 0 : i32
    %c0_i32_1 = arith.constant 0 : i32
    return %c0_i32, %c0_i32_0 : i32, i32
  }
  func.func @transform_5(%arg0: i32, %arg1: i32) -> (i32, i32) {
    %c0_i32 = arith.constant 0 : i32
    %c0_i32_0 = arith.constant 0 : i32
    %c0_i32_1 = arith.constant 0 : i32
    return %c0_i32, %c0_i32_0 : i32, i32
  }
  func.func @transform_6(%arg0: i32, %arg1: i32) -> (i32, i32) {
    %c0_i32 = arith.constant 0 : i32
    %c0_i32_0 = arith.constant 0 : i32
    %c0_i32_1 = arith.constant 0 : i32
    return %c0_i32, %c0_i32_0 : i32, i32
  }
  func.func @transform_7(%arg0: i32, %arg1: i32) -> (i32, i32) {
    %c0_i32 = arith.constant 0 : i32
    %c0_i32_0 = arith.constant 0 : i32
    %c0_i32_1 = arith.constant 0 : i32
    return %c0_i32, %c0_i32_0 : i32, i32
  }
  func.func @transform_8(%arg0: i32, %arg1: i32) -> (i32, i32, i32) {
    %c0_i32 = arith.constant 0 : i32
    %c0_i32_0 = arith.constant 0 : i32
    %c0_i32_1 = arith.constant 0 : i32
    return %arg0, %c0_i32, %c0_i32_0 : i32, i32, i32
  }
}

</mosaic_0001>

<bundles_post_ra>
// kernel: tpu_custom_call.1
= control target key start
LH: loop header
LB: loop body
LE: loop exit
PB: predicated region body
PF: predicated region fallthrough
CT: control target
= control target key end

     0   :  { %s4835_s0 = inlined_call_operand.vmem [shape: f32[8], index: 0, kind: input, shape index: {}]   ;;  %s4836_s1 = inlined_call_operand.vmem [shape: f32[16,16], index: 1, kind: input, shape index: {}]   ;;  %s4837_s2 = inlined_call_operand.vmem [shape: f32[2,8,16,8], index: 2, kind: input, shape index: {}]   ;;  %s4838_s3 = inlined_call_operand.hbm [shape: f32[2,32,128], index: 3, kind: input, shape index: {}]   ;;  %s4839_s4 = inlined_call_operand.hbm [shape: f32[4,384], index: 4, kind: input, shape index: {}]   ;;  %s4840_s5 = inlined_call_operand.vmem [shape: f32[128,384], index: 5, kind: input, shape index: {}]   ;;  %s4841_s6 = inlined_call_operand.hbm [shape: f32[128,128], index: 6, kind: input, shape index: {}]   ;;  %s4842_s7 = inlined_call_operand.vmem [shape: f32[1,384], index: 7, kind: input, shape index: {}]   ;;  %s4843_s8 = inlined_call_operand.hbm [shape: f32[2,32,128], index: 8, kind: output, shape index: {}]  }
   0x1   :  { %4853 = sst [smem:[#allocation20_spill]] %s4835_s0 }
   0x2   :  { %4854 = sst [smem:[#allocation21_spill]] %s4838_s3 }
   0x3   :  { %4855 = sst [smem:[#allocation22_spill]] %s4839_s4 }
   0x4   :  { %4856 = sst [smem:[#allocation23_spill]] %s4841_s6 }
   0x5   :  { %13 = vsyncpa [#allocation6], 0 }
   0x6   :  { %14 = vsyncpa [#allocation4], 0 }
   0x7   :  { %16 = vsyncpa [#allocation4 + $0x1], 0 }
   0x8   :  { %17 = vsyncpa [#allocation9], 0 }
   0x9   :  { %18 = vsyncpa [#allocation5], 0 }
   0xa   :  { %20 = vsyncpa [#allocation5 + $0x1], 0  ;;  %s3930_s27 = smov 0   ;;  %s3932_s28 = smov 0  }
   0xb   :  { %s3934_s29 = smov 0   ;;  %s3936_s30 = smov 0  }
   0xc   :  { %s3938_s9 = smov 0   ;;  %s3940_s10 = smov 0  }
   0xd   :  { %s3942_s11 = smov 0   ;;  %s3944_s12 = smov 0  }
   0xe LB: > { %4857 = sst [smem:[#allocation16_spill]] %s3843_s27  ;;  %s2642_s13 = sadd.s32 4294967295, %s3871_s12   ;;  %s3871_s12 = sphi %s3944_s12, %s26_s12   ;;  %s3867_s11 = sphi %s3942_s11, %s4891_s11   ;;  %s3863_s10 = sphi %s3940_s10, %s4890_s10   ;;  %s3859_s9 = sphi %s3938_s9, %s4889_s9   ;;  %s3855_s30 = sphi %s3936_s30, %s4888_s30   ;;  %s3851_s29 = sphi %s3934_s29, %s4887_s29   ;;  %s3847_s28 = sphi %s3932_s28, %s4886_s28   ;;  %s3843_s27 = sphi %s3930_s27, %s4885_s27  }
   0xf   : > { %s2643_s14 = sadd.s32 4294967294, %s3871_s12   ;;  %p128_p0 = scmp.ne.s32.totalorder %s3847_s28, %s3843_s27 }
  0x10   : > { %p3974_p1 = scmp.eq.s32.totalorder %s2642_s13, 0  ;;  %p3978_p2 = scmp.eq.s32.totalorder %s2642_s13, 3 }
  0x11   : > { %p242_p3 = scmp.eq.s32.totalorder %s2643_s14, 3  ;;  %p2644_p5 = scmp.ge.s32.totalorder %s3871_s12, 1 }
  0x12   : > { %s4858_s15 = scalar_select %p3974_p1, 1, 0 }
  0x13   : > { %s4859_s16 = scalar_select %p3978_p2, 1, 0 }
  0x14   : > { %p3984_p4 = por %p3974_p1, %p128_p0  ;;  %p3989_p6 = por %p242_p3, %p128_p0 }
  0x15   : > { %p249_p7 = scmp.lt.s32.totalorder %s3871_s12, 5  ;;  %s3873_s20 = smov [#allocation8]  }
  0x16   : > { %s4860_s17 = scalar_select %p3984_p4, 1, 0 }
  0x17   : > { %s4861_s18 = scalar_select %p3989_p6, 1, 0 }
  0x18   : > { %p3994_p8 = pnand %p2644_p5, %p249_p7  ;;  %s276_s21 = sshll.u32 %s3873_s20, 4  ;;  %s277_s21 = int_to_ptr.vmem [resolvable:$true] %s276_s21 }
  0x19   : > { %4862 = sst [smem:[#allocation17_spill]] %s4861_s18  ;;  %s4865_s0 = sld [smem:[#allocation20_spill]] }
  0x1a   : > { %s4863_s19 = scalar_select %p3994_p8, 1, 0 }
  0x1b   : > { %p3403_p9 = pneg %p3994_p8  ;;  %s4866_s4 = sld [smem:[#allocation22_spill]] }
  0x1d   : > { %p4002_p10 = pnand %p3403_p9, %p3974_p1 }
  0x1f   : > { %s262_s25 = sshll.u32 %s4865_s0, 4  ;;  %p4019_p12 = pneg %p4002_p10  ;;  %s4009_s25 = int_to_ptr.vmem [resolvable:$true] %s262_s25 }
  0x21   : > { %s3664_s14 = scalar_lea.hbm %s4866_s4, 192 }
  0x22   : > { %p3665_p11 = scmp.ne.s32.totalorder %s4866_s4, %s3664_s14  ;;  %p3671_p3 = scmp.lt.u32.totalorder %s3664_s14, %s4866_s4 }
  0x24   : > { %p3667_p13 = pnand %p4019_p12, %p3665_p11 }
  0x26   : > { %p3668_p0 = pneg %p3667_p13 }
  0x28   : > { %p3673_p5 = pnand %p3671_p3, %p3668_p0 }
  0x2a   : > { %3676 = shalt.err (!%p3673_p5)
}
  0x2b   : > { %s3677_s26 = scalar_lea.vmem %s277_s21, 192  ;;  %p3685_p4 = scmp.lt.s32.totalorder %s277_s21, %s277_s21 }
  0x2c   : > { %p3678_p7 = scmp.ne.s32.totalorder %s277_s21, %s3677_s26  ;;  %p3686_p1 = scmp.lt.s32.totalorder %s3677_s26, %s3677_s26 }
  0x2e   : > { %p3680_p9 = pnand %p3678_p7, %p4019_p12  ;;  %p3687_p8 = por %p3686_p1, %p3685_p4 }
  0x30   : > { %p3681_p6 = pneg %p3680_p9 }
  0x32   : > { %p3688_p2 = pnand %p3687_p8, %p3681_p6 }
  0x34   : > { %3691 = shalt.err (!%p3688_p2)
}
  0x35   : > { %3409 = dma.hbm_to_vmem [thread:$0]  (!%p4002_p10), %s4866_s4, 192, %s277_s21, [#allocation9]  }
  0x36   : > { %s3692_s14 = scalar_lea.vmem %s4009_s25, 16  ;;  %p3700_p3 = scmp.lt.s32.totalorder %s4009_s25, %s4009_s25 }
  0x37   : > { %p3693_p11 = scmp.ne.s32.totalorder %s4009_s25, %s3692_s14  ;;  %p3701_p1 = scmp.lt.s32.totalorder %s3692_s14, %s3692_s14 }
  0x39   : > { %p3695_p13 = pnand %p3693_p11, %p4019_p12  ;;  %p3702_p4 = por %p3701_p1, %p3700_p3 }
  0x3b   : > { %p3696_p0 = pneg %p3695_p13 }
  0x3d   : > { %p3703_p2 = pnand %p3702_p4, %p3696_p0 }
  0x3f   : > { %3706 = shalt.err (!%p3703_p2)
}
  0x40   : > { %s3874_s20 = smov [#allocation3]   ;;  %s3875_s23 = smov [#allocation10]  }
  0x41   : > { %3406 = dma.vmem_to_smem (!%p4002_p10), %s4009_s25, 16, %s3874_s20, [#allocation6]  }
  0x42   : > { %s289_s24 = sshll.u32 %s3875_s23, 4  ;;  %s4868_s6 = sld [smem:[#allocation23_spill]]  ;;  %s290_s24 = int_to_ptr.vmem [resolvable:$true] %s289_s24 }
  0x48   : > { %s3707_s18 = scalar_lea.hbm %s4868_s6, 2048 }
  0x49   : > { %p3708_p6 = scmp.ne.s32.totalorder %s4868_s6, %s3707_s18  ;;  %p3714_p7 = scmp.lt.u32.totalorder %s3707_s18, %s4868_s6 }
  0x4b   : > { %p3710_p8 = pnand %p3708_p6, %p4019_p12 }
  0x4d   : > { %p3711_p5 = pneg %p3710_p8 }
  0x4f   : > { %p3716_p9 = pnand %p3714_p7, %p3711_p5 }
  0x51   : > { %3719 = shalt.err (!%p3716_p9)
}
  0x52   : > { %s3720_s25 = scalar_lea.vmem %s290_s24, 2048  ;;  %p3728_p3 = scmp.lt.s32.totalorder %s290_s24, %s290_s24 }
  0x53   : > { %p3721_p11 = scmp.ne.s32.totalorder %s290_s24, %s3720_s25  ;;  %p3729_p1 = scmp.lt.s32.totalorder %s3720_s25, %s3720_s25 }
  0x55   : > { %p3723_p13 = pnand %p3721_p11, %p4019_p12  ;;  %p3730_p4 = por %p3729_p1, %p3728_p3 }
  0x57   : > { %p3724_p0 = pneg %p3723_p13 }
  0x59   : > { %p3731_p2 = pnand %p3730_p4, %p3724_p0 }
  0x5b   : > { %3734 = shalt.err (!%p3731_p2)
}
  0x5c   : > { %s4850_s0 = smov 128   ;;  %s4851_s4 = smov 8  }
  0x5d   : > { %3412 = dma.hbm_to_vmem [thread:$0]  (!%p4002_p10), %s4868_s6, 2048, %s290_s24, [#allocation9], %s4850_s0, %s4850_s0, %s4851_s4  }
  0x5e   : > { %s35_s23 = sadd.s32 1, %s3863_s10  ;;  %s38_s21 = sadd.s32 1, %s3867_s11 }
  0x5f   : > { %p36_p12 = scmp.ge.s32.totalorder %s35_s23, 2  ;;  %s115_s26 = sadd.s32 1, %s3851_s29 }
  0x60   : > { %p122_p6 = scmp.ne.s32.totalorder %s3851_s29, %s3847_s28  ;;  %p123_p8 = scmp.eq.s32.totalorder %s3871_s12, 0 }
  0x61   : > { %s4893_s23 = smov (%p36_p12, %s35_s23), 0  ;;  %s4895_s21 = smov (!%p36_p12, %s38_s21), %s3867_s11 }
  0x62   : > { %4869 = sst [smem:[#allocation18_spill]] %s4893_s23  ;;  %p4870_p5 = scmp.ne.s32.totalorder %s4859_s16, 0 }
  0x63   : > { %p40_p9 = scmp.ge.s32.totalorder %s4895_s21, 2  ;;  %p3424_p10 = scmp.lt.s32.totalorder %s3871_s12, 4 }
  0x64   : > { %p4076_p7 = por %p4870_p5, %p122_p6  ;;  %p124_p11 = por %p123_p8, %p122_p6 }
  0x65   : > { %s320_s24 = sand.u32 1, %s3851_s29   ;;  %s4897_s21 = smov (%p40_p9, %s4895_s21), 0 }
  0x66   : > { %4872 = sst [smem:[#allocation19_spill]] %s4897_s21  ;;  %s2649_s18 = sshll.u32 %s320_s24, 5 }
  0x67   : > { %s112_s13 = ssub.s32 %s3867_s11, %s4897_s21  ;;  %s2759_s14 = sshll.u32 %s3867_s11, 9 }
  0x68   : > { %p113_p13 = scmp.eq.s32.totalorder %s112_s13, 0  ;;  %s4873_s3 = sld [smem:[#allocation21_spill]] }
  0x69   : > { %s324_s20 = scalar_lea.vmem [#allocation7], %s2649_s18  ;;  %p4099_p0 = pnand %p3424_p10, %p124_p11 }
  0x6a   : > { %s331_s0 = sshll.u32 %s324_s20, 4  ;;  %s4103_s13 = scalar_lea.sflag [#allocation4], %s320_s24  ;;  %s4095_s0 = int_to_ptr.vmem [resolvable:$true] %s331_s0 }
  0x6b   : > { %s4093_s4 = scalar_select %p113_p13, %s3851_s29, %s115_s26  }
  0x6c   : > { %p3737_p1 = pneg %p4099_p0 }
  0x6e   : > { %s4090_s16 = scalar_lea.hbm %s4873_s3, %s2759_s14  ;;  %s3740_s25 = scalar_lea.hbm %s4873_s3, 1024 }
  0x6f   : > { %s3735_s14 = scalar_lea.hbm %s4090_s16, 512  ;;  %p3741_p12 = scmp.lt.u32.totalorder %s4090_s16, %s4873_s3 }
  0x70   : > { %p3736_p3 = scmp.ne.s32.totalorder %s4090_s16, %s3735_s14  ;;  %p3742_p6 = scmp.lt.u32.totalorder %s3740_s25, %s3735_s14 }
  0x71   : > { %p3744_p5 = scmp.lt.u32.totalorder %s3735_s14, %s4090_s16 }
  0x72   : > { %p3738_p4 = pnand %p3737_p1, %p3736_p3  ;;  %p3743_p8 = por %p3742_p6, %p3741_p12 }
  0x74   : > { %p3739_p2 = pneg %p3738_p4  ;;  %p3745_p9 = por %p3744_p5, %p3743_p8 }
  0x76   : > { %p3746_p10 = pnand %p3745_p9, %p3739_p2 }
  0x78   : > { %3749 = shalt.err (!%p3746_p10)
}
  0x79   : > { %s3750_s24 = scalar_lea.vmem %s4095_s0, 512  ;;  %s3878_s26 = smov [#allocation7]  }
  0x7a   : > { %p3751_p11 = scmp.ne.s32.totalorder %s4095_s0, %s3750_s24  ;;  %s3755_s18 = sshll.u32 %s3878_s26, 4  ;;  %s3756_s18 = int_to_ptr.vmem [resolvable:$false] %s3755_s18 }
  0x7b   : > { %s3757_s27 = scalar_lea.vmem %s3756_s18, 1024  ;;  %p3758_p4 = scmp.lt.s32.totalorder %s4095_s0, %s3756_s18 }
  0x7c   : > { %p3753_p13 = pnand %p3751_p11, %p3737_p1  ;;  %p3759_p12 = scmp.lt.s32.totalorder %s3757_s27, %s3750_s24 }
  0x7e   : > { %p3754_p3 = pneg %p3753_p13  ;;  %p3760_p6 = por %p3759_p12, %p3758_p4 }
  0x80   : > { %p3761_p8 = pnand %p3760_p6, %p3754_p3 }
  0x82   : > { %3764 = shalt.err (!%p3761_p8)
}
  0x83   : > { %s4875_s14 = smov 8   ;;  %s4876_s25 = smov 128  }
  0x84   : > { %3416 = dma.hbm_to_vmem [thread:$0]  (!%p4099_p0), %s4090_s16, 512, %s4095_s0, %s4103_s13, %s4876_s25, %s4876_s25, %s4875_s14  }
  0x85   : > { %p4877_p1 = scmp.ne.s32.totalorder %s4863_s19, 0 }
  0x86   : > { %p4878_p2 = scmp.ne.s32.totalorder (!%p4877_p1), %s4858_s15, 0 }
  0x87   : > { %343 = sbr.rel (%p4877_p1) target bundleno = 2410 (0x96a), region = 52 }
  0x8e   : > { %3826 = dma.done.wait (%p4878_p2), [#allocation6], 16  }
  0x8f   : > { %3828 = vsyncadd (%p4878_p2), [#allocation6], 4294967280  ;;  %s4141_s20 = sand.u32 1, %s3847_s28   ;;  %p4879_p5 = scmp.ne.s32.totalorder %s4860_s17, 0 }
  0x90   : > { %s2654_s6 = sshll.u32 %s4141_s20, 5  ;;  %s350_s24 = scalar_lea.sflag [#allocation4], %s4141_s20 }
  0x91   : > { %s353_s26 = scalar_lea.vmem [#allocation7], %s2654_s6 }
  0x92   : > { %3830 = dma.done.wait (%p4879_p5), %s350_s24, 512  }
  0x93   : > { %3832 = vsyncadd (%p4879_p5), %s350_s24, 4294966784 }
  0x94   : > { %3834 = dma.done.wait (%p4878_p2), [#allocation9], 2240  }
  0x95   : > { %3836 = vsyncadd (%p4878_p2), [#allocation9], 4294965056 }
  0x96   : > { %366 = sfence }
  0x97   : > { %s4154_s19 = sshll.u32 %s3855_s30, 2  ;;  %v4156_v0 = vld [vmem:[%s353_s26] sm:$0xff]  ;;  %v4158_v1 = vld [vmem:[%s353_s26 + $0x8] sm:$0xff]  ;;  %v4160_v2 = vld [vmem:[%s353_s26 + $0x10] sm:$0xff]  ;;  %p406_p0 = scmp.lt.s32.totalorder %s3859_s9, 1 }
  0x98   : > { %p408_p9 = scmp.lt.s32.totalorder %s4154_s19, 7  ;;  %v4164_v3 = vld [vmem:[%s353_s26 + $0x18] sm:$0xff]  ;;  %v4169_v4 = vld [vmem:[%s4836_s1] sm:$0xff]  ;;  %v4174_v5 = vld [vmem:[%s4836_s1 + $0x8] sm:$0xff]  ;;  %s4183_s23 = scalar_lea.vmem [#allocation11], %s2654_s6 }
  0x99   : > { %s407_s13 = scalar_select %p406_p0, %s3859_s9, 1 }
  0x9a   : > { %s409_s18 = scalar_select %p408_p9, %s4154_s19, 7 }
  0x9b   : > { %s2660_s27 = sshll.u32 %s407_s13, 4  ;;  %p2662_p10 = scmp.ne.s32.totalorder %s3855_s30, 0 }
  0x9c   : > { %s2659_s14 = sshll.u32 %s409_s18, 1  ;;  %v427_v6 = vld [vmem:[%s4840_s5 + $0x8] sm:$0xff] (!%p2662_p10)  ;;  %v430_v7 = vld [vmem:[%s4840_s5 + $0x20] sm:$0xff] (!%p2662_p10)  ;;  %2929 = vmatprep.mubr.f32.mxu1 (!%p2662_p10), %v4156_v0  ;;  %v429_v10 = vld [vmem:[%s4840_s5 + $0x18] sm:$0xff] (!%p2662_p10)  ;;  %v3879_v13 = vmov (!%p2662_p10), 0.0  }
  0x9d   : > { %s412_s25 = sadd.s32 %s2660_s27, %s2659_s14  ;;  %425 = sbr.rel (%p2662_p10) target bundleno = 419 (0x1a3), region = 72  ;;  %v426_v8 = vld [vmem:[%s4840_s5] sm:$0xff] (!%p2662_p10)  ;;  %v3147_v9 = vpack.c.bf16 (!%p2662_p10), %v430_v7, %v427_v6  ;;  %v433_v11 = vld [vmem:[%s4840_s5 + $0x38] sm:$0xff] (!%p2662_p10)  ;;  %v436_v12 = vld [vmem:[%s4840_s5 + $0x50] sm:$0xff] (!%p2662_p10)  ;;  %555 = vmatprep.mubr.f32.mxu0 (!%p2662_p10), %v3879_v13  ;;  %677 = vst [vmem:[%s4183_s23] sm:$0xff] (!%p2662_p10), %v3879_v13 }
  0x9e   : > { %s2661_s24 = sshll.u32 %s412_s25, 3  ;;  %678 = vst [vmem:[%s4183_s23 + $0x8] sm:$0xff] (!%p2662_p10), %v3879_v13  ;;  %679 = vst [vmem:[%s4183_s23 + $0x10] sm:$0xff] (!%p2662_p10), %v3879_v13  ;;  %v3149_v14 = vpack.c.bf16 (!%p2662_p10), %v429_v10, %v426_v8  ;;  %v3151_v15 = vpack.c.bf16 (!%p2662_p10), %v436_v12, %v433_v11  ;;  %v432_v16 = vld [vmem:[%s4840_s5 + $0x30] sm:$0xff] (!%p2662_p10)  ;;  %v435_v17 = vld [vmem:[%s4840_s5 + $0x48] sm:$0xff] (!%p2662_p10) }
  0x9f   : > { %s4181_s26 = scalar_lea.vmem %s4837_s2, %s2661_s24  ;;  %680 = vst [vmem:[%s4183_s23 + $0x18] sm:$0xff] (!%p2662_p10), %v3879_v13  ;;  %v428_v18 = vld [vmem:[%s4840_s5 + $0x10] sm:$0xff] (!%p2662_p10)  ;;  %3148 = vmatprep.subr.bf16.mxu0 (!%p2662_p10), %v3147_v9  ;;  %v431_v19 = vld [vmem:[%s4840_s5 + $0x28] sm:$0xff] (!%p2662_p10)  ;;  %v442_v21 = vld [vmem:[%s4840_s5 + $0x80] sm:$0xff] (!%p2662_p10)  ;;  %v3153_v22 = vpack.c.bf16 (!%p2662_p10), %v435_v17, %v432_v16 }
  0xa0   : > { %v439_v20 = vld [vmem:[%s4840_s5 + $0x68] sm:$0xff] (!%p2662_p10)  ;;  %3150 = vmatpush1.bf16.msra.mxu0 (!%p2662_p10), %v3149_v14  ;;  %v3179_v23 = vpack.c.bf16 (!%p2662_p10), %v431_v19, %v428_v18  ;;  %v434_v24 = vld [vmem:[%s4840_s5 + $0x40] sm:$0xff] (!%p2662_p10)  ;;  %v441_v27 = vld [vmem:[%s4840_s5 + $0x78] sm:$0xff] (!%p2662_p10) }
  0xa1   : > { %3152 = vmatprep.subr.bf16.mxu0 (!%p2662_p10), %v3151_v15  ;;  %v3155_v25 = vpack.c.bf16 (!%p2662_p10), %v442_v21, %v439_v20  ;;  %v438_v26 = vld [vmem:[%s4840_s5 + $0x60] sm:$0xff] (!%p2662_p10)  ;;  %v437_v28 = vld [vmem:[%s4840_s5 + $0x58] sm:$0xff] (!%p2662_p10)  ;;  %v448_v31 = vld [vmem:[%s4840_s5 + $0xb0] sm:$0xff] (!%p2662_p10) }
  0xa2   : > { %3180 = vmatprep.subr.bf16.mxu1 (!%p2662_p10), %v3179_v23  ;;  %v3183_v29 = vpack.c.bf16 (!%p2662_p10), %v437_v28, %v434_v24  ;;  %v445_v30 = vld [vmem:[%s4840_s5 + $0x98] sm:$0xff] (!%p2662_p10)  ;;  %v440_v32 = vld [vmem:[%s4840_s5 + $0x70] sm:$0xff] (!%p2662_p10)  ;;  %v443_v33 = vld [vmem:[%s4840_s5 + $0x88] sm:$0xff] (!%p2662_p10)  ;;  %v3157_v34 = vpack.c.bf16 (!%p2662_p10), %v441_v27, %v438_v26 }
  0xa3   : > { %3182 = vmatpush3.bf16.msra.mxu1 (!%p2662_p10), %v3179_v23  ;;  %v444_v35 = vld [vmem:[%s4840_s5 + $0x90] sm:$0xff] (!%p2662_p10)  ;;  %v3187_v36 = vpack.c.bf16 (!%p2662_p10), %v443_v33, %v440_v32  ;;  %v3159_v37 = vpack.c.bf16 (!%p2662_p10), %v448_v31, %v445_v30  ;;  %v447_v38 = vld [vmem:[%s4840_s5 + $0xa8] sm:$0xff] (!%p2662_p10)  ;;  %v446_v39 = vld [vmem:[%s4840_s5 + $0xa0] sm:$0xff] (!%p2662_p10) }
  0xa4   : > { %3154 = vmatpush1.bf16.msra.mxu0 %v3153_v22  ;;  %3184 = vmatprep.subr.bf16.mxu1 %v3183_v29  ;;  %v449_v40 = vld [vmem:[%s4840_s5 + $0xb8] sm:$0xff]  ;;  %v451_v41 = vld [vmem:[%s4840_s5 + $0xc8] sm:$0xff]  ;;  %v454_v42 = vld [vmem:[%s4840_s5 + $0xe0] sm:$0xff]  ;;  %v3161_v43 = vpack.c.bf16 %v447_v38, %v444_v35  ;;  %v476_v22 = vlaneseq }
  0xa5   : > { %3156 = vmatprep.subr.bf16.mxu0 %v3155_v25  ;;  %v450_v44 = vld [vmem:[%s4840_s5 + $0xc0] sm:$0xff]  ;;  %v3191_v45 = vpack.c.bf16 %v449_v40, %v446_v39  ;;  %v3163_v46 = vpack.c.bf16 %v454_v42, %v451_v41  ;;  %v453_v47 = vld [vmem:[%s4840_s5 + $0xd8] sm:$0xff]  ;;  %v452_v48 = vld [vmem:[%s4840_s5 + $0xd0] sm:$0xff] }
  0xa6   : > { %v455_v49 = vld [vmem:[%s4840_s5 + $0xe8] sm:$0xff]  ;;  %v457_v50 = vld [vmem:[%s4840_s5 + $0xf8] sm:$0xff]  ;;  %v460_v51 = vld [vmem:[%s4840_s5 + $0x110] sm:$0xff]  ;;  %v3165_v52 = vpack.c.bf16 %v453_v47, %v450_v44  ;;  %v477_v23 = vshrl.u32 %v476_v22, 7 }
  0xa7   : > { %3186 = vmatpush3.bf16.msra.mxu1 %v3183_v29  ;;  %v456_v53 = vld [vmem:[%s4840_s5 + $0xf0] sm:$0xff]  ;;  %v3195_v54 = vpack.c.bf16 %v455_v49, %v452_v48  ;;  %v3167_v55 = vpack.c.bf16 %v460_v51, %v457_v50  ;;  %v459_v56 = vld [vmem:[%s4840_s5 + $0x108] sm:$0xff]  ;;  %v458_v57 = vld [vmem:[%s4840_s5 + $0x100] sm:$0xff] }
  0xa8   : > { %3158 = vmatpush1.bf16.msra.mxu0 %v3157_v34  ;;  %3188 = vmatprep.subr.bf16.mxu1 %v3187_v36  ;;  %v461_v58 = vld [vmem:[%s4840_s5 + $0x118] sm:$0xff]  ;;  %v463_v59 = vld [vmem:[%s4840_s5 + $0x128] sm:$0xff]  ;;  %v466_v60 = vld [vmem:[%s4840_s5 + $0x140] sm:$0xff]  ;;  %v3169_v61 = vpack.c.bf16 %v459_v56, %v456_v53  ;;  %v478_v24 = vsub.s32 0, %v477_v23  ;;  %v482_v26 = vsub.s32 1, %v477_v23  ;;  %v486_v27 = vsub.s32 2, %v477_v23 }
  0xa9   : > { %3160 = vmatprep.subr.bf16.mxu0 %v3159_v37  ;;  %v462_v62 = vld [vmem:[%s4840_s5 + $0x120] sm:$0xff]  ;;  %v3199_v63 = vpack.c.bf16 %v461_v58, %v458_v57  ;;  %v3171_v6 = vpack.c.bf16 %v466_v60, %v463_v59  ;;  %v465_v7 = vld [vmem:[%s4840_s5 + $0x138] sm:$0xff]  ;;  %v464_v8 = vld [vmem:[%s4840_s5 + $0x130] sm:$0xff] }
  0xaa   : > { %v467_v9 = vld [vmem:[%s4840_s5 + $0x148] sm:$0xff]  ;;  %v469_v10 = vld [vmem:[%s4840_s5 + $0x158] sm:$0xff]  ;;  %v472_v11 = vld [vmem:[%s4840_s5 + $0x170] sm:$0xff]  ;;  %v3173_v12 = vpack.c.bf16 %v465_v7, %v462_v62 }
  0xab   : > { %3190 = vmatpush3.bf16.msra.mxu1 %v3187_v36  ;;  %v468_v14 = vld [vmem:[%s4840_s5 + $0x150] sm:$0xff]  ;;  %v3203_v15 = vpack.c.bf16 %v467_v9, %v464_v8  ;;  %v3175_v16 = vpack.c.bf16 %v472_v11, %v469_v10  ;;  %v471_v17 = vld [vmem:[%s4840_s5 + $0x168] sm:$0xff]  ;;  %v470_v18 = vld [vmem:[%s4840_s5 + $0x160] sm:$0xff] }
  0xac   : > { %3162 = vmatpush1.bf16.msra.mxu0 %v3161_v43  ;;  %3192 = vmatprep.subr.bf16.mxu1 %v3191_v45  ;;  %v473_v19 = vld [vmem:[%s4840_s5 + $0x178] sm:$0xff]  ;;  %v3177_v20 = vpack.c.bf16 %v471_v17, %v468_v14  ;;  %v474_v25 = vld [vmem:[%s4842_s7] sm:$0x7] }
  0xad   : > { %3164 = vmatprep.subr.bf16.mxu0 %v3163_v46  ;;  %v3207_v21 = vpack.c.bf16 %v473_v19, %v470_v18  ;;  %v479_v28 = vrot.slane %v474_v25, %v478_v24  ;;  %v483_v29 = vrot.slane %v474_v25, %v482_v26  ;;  %v487_v31 = vrot.slane %v474_v25, %v486_v27 }
  0xaf   : > { %3194 = vmatpush3.bf16.msra.mxu1 %v3191_v45 }
  0xb0   : > { %3166 = vmatpush1.bf16.msra.mxu0 %v3165_v52  ;;  %3196 = vmatprep.subr.bf16.mxu1 %v3195_v54 }
  0xb1   : > { %3168 = vmatprep.subr.bf16.mxu0 %v3167_v55 }
  0xb3   : > { %3198 = vmatpush3.bf16.msra.mxu1 %v3195_v54 }
  0xb4   : > { %3170 = vmatpush1.bf16.msra.mxu0 %v3169_v61  ;;  %3200 = vmatprep.subr.bf16.mxu1 %v3199_v63 }
  0xb5   : > { %3172 = vmatprep.subr.bf16.mxu0 %v3171_v6 }
  0xb7   : > { %3202 = vmatpush3.bf16.msra.mxu1 %v3199_v63 }
  0xb8   : > { %3174 = vmatpush1.bf16.msra.mxu0 %v3173_v12  ;;  %3204 = vmatprep.subr.bf16.mxu1 %v3203_v15 }
  0xb9   : > { %3176 = vmatprep.subr.bf16.mxu0 %v3175_v16 }
  0xbb   : > { %3206 = vmatpush3.bf16.msra.mxu1 %v3203_v15 }
  0xbc   : > { %3178 = vmatpush1.bf16.msra.mxu0 %v3177_v20  ;;  %3208 = vmatprep.subr.bf16.mxu1 %v3207_v21 }
  0xbf   : > { %556 = vmatmul.mubr.f32.vlgmr.msra.gmra.mrb[0].mxu0 %v4156_v0  ;;  %3210 = vmatpush3.bf16.msra.mxu1 %v3207_v21 }
  0xc0   : > { %561 = vmatprep.mubr.f32.mxu0 %v3879_v13 }
  0xc2   : > { %2930 = vmatmul.mubr.f32.vlgmr.msra.gmra.mrb[0].mxu1 %v4158_v1 }
  0xc3   : > { %562 = vmatmul.mubr.f32.gmra.mrb[2].mxu0 %v4158_v1  ;;  %2932 = vmatprep.mubr.f32.mxu1 %v4160_v2 }
  0xc4   : > { %567 = vmatprep.mubr.f32.mxu0 %v3879_v13 }
  0xc6   : > { %2933 = vmatmul.mubr.f32.gmra.mrb[2].mxu1 %v4164_v3 }
  0xc7   : > { %568 = vmatmul.mubr.f32.gmra.mrb[4].mxu0 %v4160_v2 }
  0xc8   : > { %573 = vmatprep.mubr.f32.mxu0 %v3879_v13 }
  0xcb   : > { %574 = vmatmul.mubr.f32.gmra.mrb[6].mxu0 %v4164_v3 }
 0x192   : > { %v557_v30 = vpop.f32.mrb[0].mxu0 }
 0x193   : > { %v558_v32 = vadd.f32 %v557_v30, %v479_v28  ;;  %v559_v33 = vpop.f32.mrb[1].mxu0 }
 0x194   : > { %v560_v34 = vadd.f32 %v559_v33, %v483_v29 }
 0x195   : > { %665 = vst [vmem:[#allocation2] sm:$0xff] %v558_v32  ;;  %v2931_v13 = vpop.f32.mrb[0].mxu1 }
 0x196   : > { %666 = vst [vmem:[#allocation2 + $0x8] sm:$0xff] %v560_v34  ;;  %v563_v35 = vpop.f32.mrb[2].mxu0  ;;  %v652_v36 = vadd.f32 %v2931_v13, %v487_v31  ;;  %v646_v37 = vpop.f32.mrb[1].mxu1 }
 0x197   : > { %v564_v38 = vadd.f32 %v563_v35, %v479_v28  ;;  %v565_v39 = vpop.f32.mrb[3].mxu0  ;;  %v647_v40 = vadd.f32 %v646_v37, %v487_v31 }
 0x198   : > { %v566_v41 = vadd.f32 %v565_v39, %v483_v29  ;;  %670 = vst [vmem:[#allocation2 + $0x28] sm:$0xff] %v652_v36 }
 0x199   : > { %668 = vst [vmem:[#allocation2 + $0x18] sm:$0xff] %v564_v38  ;;  %667 = vst [vmem:[#allocation2 + $0x10] sm:$0xff] %v647_v40  ;;  %v2934_v42 = vpop.f32.mrb[2].mxu1 }
 0x19a   : > { %669 = vst [vmem:[#allocation2 + $0x20] sm:$0xff] %v566_v41  ;;  %v569_v43 = vpop.f32.mrb[4].mxu0  ;;  %v662_v44 = vadd.f32 %v2934_v42, %v487_v31  ;;  %v656_v45 = vpop.f32.mrb[3].mxu1 }
 0x19b   : > { %v570_v46 = vadd.f32 %v569_v43, %v479_v28  ;;  %v571_v47 = vpop.f32.mrb[5].mxu0  ;;  %v657_v48 = vadd.f32 %v656_v45, %v487_v31 }
 0x19c   : > { %v572_v49 = vadd.f32 %v571_v47, %v483_v29  ;;  %676 = vst [vmem:[#allocation2 + $0x58] sm:$0xff] %v662_v44 }
 0x19d   : > { %671 = vst [vmem:[#allocation2 + $0x30] sm:$0xff] %v570_v46  ;;  %673 = vst [vmem:[#allocation2 + $0x40] sm:$0xff] %v657_v48 }
 0x19e   : > { %672 = vst [vmem:[#allocation2 + $0x38] sm:$0xff] %v572_v49  ;;  %v575_v50 = vpop.f32.mrb[6].mxu0 }
 0x19f   : > { %v576_v51 = vadd.f32 %v575_v50, %v479_v28  ;;  %v577_v52 = vpop.f32.mrb[7].mxu0 }
 0x1a0   : > { %v578_v53 = vadd.f32 %v577_v52, %v483_v29 }
 0x1a1   : > { %674 = vst [vmem:[#allocation2 + $0x48] sm:$0xff] %v576_v51 }
 0x1a2   : > { %675 = vst [vmem:[#allocation2 + $0x50] sm:$0xff] %v578_v53 }
 0x1a3 PF: > { %v711_v54 = vld [vmem:[%s4181_s26] sm:$0xff]  ;;  %v712_v55 = vld [vmem:[%s4181_s26 + $0x8] sm:$0xff]  ;;  %vm713_vm0 = vcmask 130048   ;;  %vm813_vm1 = vcmask 1043456   ;;  %v3880_v60 = vmov 0.0   ;;  %vm804_vm2 = vcmask 31744  }
 0x1a4   : > { %v3211_v56 = vpack.c.bf16 %v712_v55, %v711_v54  ;;  %2939 = vmatprep.mubr.msk.f32.mxu0 %vm713_vm0, %v4169_v4  ;;  %v4359_v57 = vld [vmem:[#allocation8] sm:$0xff]  ;;  %v4367_v59 = vld [vmem:[#allocation8 + $0x8] sm:$0xf]  ;;  %884 = vmatprep.mubr.f32.mxu1 %v3880_v60  ;;  %s3881_s15 = smov 124   ;;  %v695_v63 = vld [vmem:[#allocation10] sm:$0xff]  ;;  %s1156_s17 = sld [smem:[#allocation3 + %s4154_s19]] }
 0x1a5   : > { %v4363_v58 = vcombine.high %v4359_v57, %v4359_v57  ;;  %v696_v6 = vld [vmem:[#allocation10 + $0x8] sm:$0xff]  ;;  %v697_v8 = vld [vmem:[#allocation10 + $0x10] sm:$0xff]  ;;  %v698_v9 = vld [vmem:[#allocation10 + $0x18] sm:$0xff]  ;;  %s2031_s16 = sadd.s32 2, %s4154_s19  ;;  %s2469_s21 = sadd.s32 3, %s4154_s19 }
 0x1a6   : > { %3212 = vmatprep.subr.bf16.mxu0 %v3211_v56  ;;  %v4388_v7 = vpack.c.bf16 %v696_v6, %v695_v63  ;;  %v4393_v10 = vpack.c.bf16 %v698_v9, %v697_v8  ;;  %v699_v11 = vld [vmem:[#allocation10 + $0x20] sm:$0xff]  ;;  %v700_v12 = vld [vmem:[#allocation10 + $0x28] sm:$0xff]  ;;  %v701_v15 = vld [vmem:[#allocation10 + $0x30] sm:$0xff]  ;;  %s2032_s3 = sld [smem:[#allocation3 + %s2031_s16]]  ;;  %s2506_s6 = sshll.u32 %s4183_s23, 4  ;;  %s4779_s6 = int_to_ptr.vmem [resolvable:$true] %s2506_s6 }
 0x1a7   : > { %3214 = vmatpush3.bf16.msra.mxu0 %v3211_v56  ;;  %2665 = vmatprep.subr.msk.mxu1 %vm813_vm1, %v4363_v58  ;;  %v4397_v14 = vpack.c.bf16 %v700_v12, %v699_v11  ;;  %v702_v16 = vld [vmem:[#allocation10 + $0x38] sm:$0xff]  ;;  %v703_v18 = vld [vmem:[#allocation10 + $0x40] sm:$0xff]  ;;  %v704_v19 = vld [vmem:[#allocation10 + $0x48] sm:$0xff]  ;;  %s2470_s30 = sld [smem:[#allocation3 + %s2469_s21]]  ;;  %s3765_s14 = scalar_lea.vmem %s4779_s6, 512 }
 0x1a8   : > { %2666 = vmatpush1.msk.msra.mxu1 %vm813_vm1, %v4359_v57  ;;  %2942 = vmatprep.subr.msk.mxu0 %vm813_vm1, %v4367_v59  ;;  %v4401_v17 = vpack.c.bf16 %v702_v16, %v701_v15  ;;  %v4405_v20 = vpack.c.bf16 %v704_v19, %v703_v18  ;;  %v705_v21 = vld [vmem:[#allocation10 + $0x50] sm:$0xff]  ;;  %v706_v22 = vld [vmem:[#allocation10 + $0x58] sm:$0xff]  ;;  %v707_v24 = vld [vmem:[#allocation10 + $0x60] sm:$0xff]  ;;  %p3766_p11 = scmp.ne.s32.totalorder %s4779_s6, %s3765_s14  ;;  %s3882_s25 = smov [#allocation11]  }
 0x1a9   : > { %2689 = vmatprep.subr.msk.mxu1 %vm813_vm1, %v4363_v58  ;;  %v4409_v23 = vpack.c.bf16 %v706_v22, %v705_v21  ;;  %v708_v25 = vld [vmem:[#allocation10 + $0x68] sm:$0xff]  ;;  %v709_v27 = vld [vmem:[#allocation10 + $0x70] sm:$0xff]  ;;  %v710_v28 = vld [vmem:[#allocation10 + $0x78] sm:$0xff]  ;;  %s3769_s24 = sshll.u32 %s3882_s25, 4  ;;  %s3770_s24 = int_to_ptr.vmem [resolvable:$false] %s3769_s24 }
 0x1aa   : > { %2940 = vmatmul.mubr.msk.f32.vlgmr.msra.gmra.mrb[0].mxu0 %vm713_vm0, %v4174_v5  ;;  %v4413_v26 = vpack.c.bf16 %v708_v25, %v707_v24  ;;  %v4417_v30 = vpack.c.bf16 %v710_v28, %v709_v27  ;;  %v4427_v32 = vld [vmem:[#allocation2 + $0x8] sm:$0xff]  ;;  %v4430_v35 = vld [vmem:[#allocation2 + $0x20] sm:$0xff]  ;;  %v2685_v44 = vld [vmem:[%s4181_s26 + $0x10] sm:$0xff]  ;;  %p3767_p13 = pnand %p3766_p11, %p4076_p7  ;;  %p3772_p4 = scmp.lt.s32.totalorder %s4779_s6, %s3770_s24 }
 0x1ab   : > { %2943 = vmatpush3.msk.msra.mxu0 %vm813_vm1, %v4367_v59  ;;  %v2686_v45 = vld [vmem:[%s4181_s26 + $0x18] sm:$0xff]  ;;  %v4444_v56 = vld [vmem:[#allocation2 + $0x50] sm:$0xff]  ;;  %v4457_v24 = vld [vmem:[#allocation2] sm:$0xff] }
 0x1ac   : > { %3216 = vmatprep.subr.bf16.mxu0 %v4388_v7  ;;  %v3247_v47 = vpack.c.bf16 %v2686_v45, %v2685_v44  ;;  %v4439_v52 = vld [vmem:[#allocation2 + $0x38] sm:$0xff]  ;;  %p3768_p3 = pneg %p3767_p13 }
 0x1ad   : > { %v4455_v22 = vld [vmem:[#allocation2 + $0x18] sm:$0xff] }
 0x27d   : > { %v2941_v61 = vpop.f32.mrb[0].mxu0 }
 0x27e   : > { %v786_v62 = vpop.f32.mrb[1].mxu0 }
 0x27f   : > { %797 = vrot.lane.b32.xlu0 %v786_v62, %s3881_s15  ;;  %2667 = vmatmul.mubr.msk.f32.vlgmr.msra.gmra.mrb[0].mxu1 %vm804_vm2, %v786_v62 }
 0x280   : > { %2944 = vmatprep.mubr.msk.f32.mxu0 %vm804_vm2, %v786_v62  ;;  %890 = vmatprep.mubr.f32.mxu1 %v3880_v60 }
 0x281   : > { %2945 = vmatmul.mubr.msk.f32.vlgmr.msra.gmra.mrb[2].mxu0 %vm804_vm2, %v2941_v61  ;;  %2690 = vmatpush1.msk.msra.mxu1 %vm813_vm1, %v4359_v57 }
 0x282   : > { %3252 = vmatprep.subr.bf16.mxu1 %v4388_v7  ;;  %3218 = vmatpush3.bf16.msra.mxu0 %v4388_v7 }
 0x283   : > { %799 = vrot.lane.b32.xlu0 %v2941_v61, %s3881_s15  ;;  %2668 = vmatmul.mubr.msk.f32.gmra.mrb[2].mxu1 %vm804_vm2, %v2941_v61 }
 0x284   : > { %896 = vmatprep.mubr.f32.mxu1 %v3880_v60  ;;  %3220 = vmatprep.subr.bf16.mxu0 %v4393_v10 }
 0x286   : > { %3222 = vmatpush3.bf16.msra.mxu0 %v4393_v10 }
 0x287   : > { %3224 = vmatprep.subr.bf16.mxu0 %v4397_v14 }
 0x28a   : > { %3226 = vmatpush3.bf16.msra.mxu0 %v4397_v14 }
 0x28b   : > { %3228 = vmatprep.subr.bf16.mxu0 %v4401_v17 }
 0x28e   : > { %3230 = vmatpush3.bf16.msra.mxu0 %v4401_v17 }
 0x28f   : > { %3232 = vmatprep.subr.bf16.mxu0 %v4405_v20 }
 0x292   : > { %3234 = vmatpush3.bf16.msra.mxu0 %v4405_v20 }
 0x293   : > { %3236 = vmatprep.subr.bf16.mxu0 %v4409_v23 }
 0x296   : > { %3238 = vmatpush3.bf16.msra.mxu0 %v4409_v23 }
 0x297   : > { %3240 = vmatprep.subr.bf16.mxu0 %v4413_v26 }
 0x29a   : > { %3242 = vmatpush3.bf16.msra.mxu0 %v4413_v26 }
 0x29b   : > { %3244 = vmatprep.subr.bf16.mxu0 %v4417_v30 }
 0x29e   : > { %3246 = vmatpush3.bf16.msra.mxu0 %v4417_v30 }
 0x29f   : > { %3248 = vmatprep.subr.bf16.mxu0 %v3247_v47 }
 0x2f1   : > { %v798_v29 = vpop.permute.xlu0 %797 }
 0x2f2   : > { %2669 = vmatmul.mubr.msk.f32.gmra.mrb[4].mxu1 %vm804_vm2, %v798_v29  ;;  %2947 = vmatprep.mubr.msk.f32.mxu0 %vm804_vm2, %v798_v29 }
 0x2f3   : > { %902 = vmatprep.mubr.f32.mxu1 %v3880_v60 }
 0x2f5   : > { %v800_v31 = vpop.permute.xlu0 %799 }
 0x2f6   : > { %2670 = vmatmul.mubr.msk.f32.gmra.mrb[6].mxu1 %vm804_vm2, %v800_v31  ;;  %2948 = vmatmul.mubr.msk.f32.gmra.mrb[4].mxu0 %vm804_vm2, %v800_v31 }
 0x2f7   : > { %1322 = vmatprep.mubr.f32.mxu1 %v3880_v60 }
 0x352   : > { %v886_v33 = vpop.f32.mrb[0].mxu1 }
 0x353   : > { %v888_v34 = vpop.f32.mrb[1].mxu1  ;;  %v887_v27 = vadd.f32 %v886_v33, %v4457_v24 }
 0x354   : > { %v889_v13 = vadd.f32 %v888_v34, %v4427_v32 }
 0x355   : > { %v2676_v29 = vmul.f32 -1.442695, %v887_v27  ;;  %v4482_v27 = vld [vmem:[#allocation2 + $0x58] sm:$0xff] }
 0x356   : > { %v2680_v36 = vmul.f32 -1.442695, %v889_v13  ;;  %v892_v37 = vpop.f32.mrb[2].mxu1 }
 0x357   : > { %v894_v38 = vpop.f32.mrb[3].mxu1  ;;  %v893_v25 = vadd.f32 %v892_v37, %v4455_v22 }
 0x358   : > { %3504 = vpow2.f32 %v2680_v36  ;;  %v895_v39 = vadd.f32 %v894_v38, %v4430_v35  ;;  %v4461_v38 = vld [vmem:[#allocation2 + $0x28] sm:$0xff] }
 0x359   : > { %v2677_v28 = vmul.f32 -1.442695, %v893_v25 }
 0x35a   : > { %v2681_v40 = vmul.f32 -1.442695, %v895_v39  ;;  %v4463_v39 = vld [vmem:[#allocation2 + $0x10] sm:$0xff] }
 0x35c   : > { %3506 = vpow2.f32 %v2681_v40 }
 0x362   : > { %v3505_v41 = vpop.eup %3504 }
 0x363   : > { %v1030_v42 = vadd.f32 1.0, %v3505_v41 }
 0x365   : > { %3508 = vrcp.f32 %v1030_v42 }
 0x366   : > { %v3507_v43 = vpop.eup %3506 }
 0x367   : > { %v1031_v46 = vadd.f32 1.0, %v3507_v43 }
 0x369   : > { %3510 = vrcp.f32 %v1031_v46 }
 0x36f   : > { %v3509_v48 = vpop.eup %3508 }
 0x370   : > { %v1042_v49 = vmul.f32 %v3509_v48, %v4156_v0 }
 0x372   : > { %2982 = vmatprep.mubr.f32.mxu0 %v1042_v49 }
 0x373   : > { %v3511_v50 = vpop.eup %3510 }
 0x374   : > { %v1043_v51 = vmul.f32 %v3511_v50, %v4158_v1 }
 0x376   : > { %2983 = vmatmul.mubr.f32.vlgmr.msra.gmra.mrb[2].mxu0 %v1043_v51 }
 0x377   : > { %3250 = vmatpush3.bf16.msra.mxu0 %v3247_v47 }
 0x378   : > { %2995 = vmatprep.subr.msk.mxu0 %vm813_vm1, %v4367_v59 }
 0x3c5   : > { %v4441_v53 = vpop.f32.mrb[4].mxu1 }
 0x3c6   : > { %v900_v54 = vpop.f32.mrb[5].mxu1 }
 0x3c7   : > { %v901_v55 = vadd.f32 %v900_v54, %v4439_v52 }
 0x3c9   : > { %v2682_v61 = vmul.f32 -1.442695, %v901_v55  ;;  %v904_v62 = vpop.f32.mrb[6].mxu1 }
 0x3ca   : > { %v906_v63 = vpop.f32.mrb[7].mxu1 }
 0x3cb   : > { %3512 = vpow2.f32 %v2682_v61  ;;  %v907_v6 = vadd.f32 %v906_v63, %v4444_v56  ;;  %v4473_v61 = vld [vmem:[#allocation2 + $0x48] sm:$0xff]  ;;  %v4475_v63 = vld [vmem:[#allocation2 + $0x30] sm:$0xff] }
 0x3cd   : > { %v2683_v8 = vmul.f32 -1.442695, %v907_v6  ;;  %v905_v6 = vadd.f32 %v904_v62, %v4473_v61 }
 0x3cf   : > { %3514 = vpow2.f32 %v2683_v8  ;;  %v899_v8 = vadd.f32 %v4441_v53, %v4475_v63 }
 0x3d5   : > { %v3513_v9 = vpop.eup %3512 }
 0x3d6   : > { %v1032_v11 = vadd.f32 1.0, %v3513_v9  ;;  %v2679_v9 = vmul.f32 -1.442695, %v905_v6 }
 0x3d8   : > { %3516 = vrcp.f32 %v1032_v11  ;;  %v2678_v11 = vmul.f32 -1.442695, %v899_v8 }
 0x3d9   : > { %v3515_v12 = vpop.eup %3514 }
 0x3da   : > { %v1033_v15 = vadd.f32 1.0, %v3515_v12 }
 0x3dc   : > { %3518 = vrcp.f32 %v1033_v15 }
 0x3dd   : > { %3520 = vpow2.f32 %v2677_v28  ;;  %v4484_v28 = vld [vmem:[#allocation2 + $0x40] sm:$0xff] }
 0x3de   : > { %3522 = vpow2.f32 %v2676_v29 }
 0x3e2   : > { %v3517_v16 = vpop.eup %3516 }
 0x3e3   : > { %v1044_v18 = vmul.f32 %v3517_v16, %v4160_v2 }
 0x3e5   : > { %2985 = vmatprep.mubr.f32.mxu0 %v1044_v18  ;;  %v2708_v18 = vld [vmem:[%s4181_s26 + $0x20] sm:$0xff] }
 0x3e6   : > { %v3519_v19 = vpop.eup %3518 }
 0x3e7   : > { %v1045_v21 = vmul.f32 %v3519_v19, %v4164_v3  ;;  %v3521_v31 = vpop.eup %3520  ;;  %v2709_v19 = vld [vmem:[%s4181_s26 + $0x28] sm:$0xff] }
 0x3e8   : > { %v3523_v34 = vpop.eup %3522  ;;  %v1007_v13 = vadd.f32 1.0, %v3521_v31  ;;  %v3283_v25 = vpack.c.bf16 %v2709_v19, %v2708_v18 }
 0x3e9   : > { %2986 = vmatmul.mubr.f32.gmra.mrb[4].mxu0 %v1045_v21  ;;  %v1006_v36 = vadd.f32 1.0, %v3523_v34 }
 0x3ea   : > { %2992 = vmatprep.mubr.msk.f32.mxu0 %vm713_vm0, %v4169_v4  ;;  %3524 = vrcp.f32 %v1007_v13 }
 0x3eb   : > { %3526 = vrcp.f32 %v1006_v36 }
 0x3ed   : > { %2993 = vmatmul.mubr.msk.f32.vlgmr.msra.gmra.mrb[6].mxu0 %vm713_vm0, %v4174_v5 }
 0x3ee   : > { %2996 = vmatpush3.msk.msra.mxu0 %vm813_vm1, %v4367_v59 }
 0x3ef   : > { %3284 = vmatprep.subr.bf16.mxu0 %v3283_v25 }
 0x3f4   : > { %v3525_v42 = vpop.eup %3524 }
 0x3f5   : > { %v3527_v43 = vpop.eup %3526  ;;  %v1144_v44 = vsub.f32 1.0, %v3525_v42  ;;  %v1140_v48 = vmul.f32 %v3525_v42, %v4158_v1 }
 0x3f6   : > { %v1143_v46 = vsub.f32 1.0, %v3527_v43  ;;  %v1139_v50 = vmul.f32 %v3527_v43, %v4156_v0 }
 0x449   : > { %v2984_v40 = vpop.f32.mrb[2].mxu0 }
 0x44a   : > { %v3355_v41 = vadd.f32 %v2984_v40, %v4461_v38  ;;  %v1112_v37 = vpop.f32.mrb[3].mxu0 }
 0x44b   : > { %v3356_v33 = vadd.f32 %v1112_v37, %v4463_v39 }
 0x44c   : > { %3528 = vtanh.f32 %v3355_v41 }
 0x44d   : > { %3530 = vtanh.f32 %v3356_v33 }
 0x44e   : > { %3532 = vpow2.f32 %v2679_v9 }
 0x44f   : > { %3534 = vpow2.f32 %v2678_v11 }
 0x456   : > { %v3529_v45 = vpop.eup %3528 }
 0x457   : > { %v3531_v47 = vpop.eup %3530  ;;  %v1148_v49 = vmul.f32 %v3529_v45, %v1144_v44 }
 0x458   : > { %v1147_v51 = vmul.f32 %v3531_v47, %v1143_v46  ;;  %v3533_v12 = vpop.eup %3532 }
 0x459   : > { %v4469_v54 = vadd.f32 %v1148_v49, %v1140_v48  ;;  %v3535_v15 = vpop.eup %3534  ;;  %v1009_v16 = vadd.f32 1.0, %v3533_v12 }
 0x45a   : > { %v4471_v55 = vadd.f32 %v1147_v51, %v1139_v50  ;;  %v1008_v21 = vadd.f32 1.0, %v3535_v15 }
 0x45b   : > { %3536 = vrcp.f32 %v1009_v16 }
 0x45c   : > { %3538 = vrcp.f32 %v1008_v21 }
 0x465   : > { %v3537_v36 = vpop.eup %3536 }
 0x466   : > { %v3539_v40 = vpop.eup %3538  ;;  %v1146_v41 = vsub.f32 1.0, %v3537_v36  ;;  %v1142_v43 = vmul.f32 %v3537_v36, %v4164_v3 }
 0x467   : > { %v1145_v33 = vsub.f32 1.0, %v3539_v40  ;;  %v1141_v45 = vmul.f32 %v3539_v40, %v4160_v2 }
 0x4bc   : > { %v2987_v62 = vpop.f32.mrb[4].mxu0 }
 0x4bd   : > { %v3357_v53 = vadd.f32 %v2987_v62, %v4482_v27  ;;  %v1122_v29 = vpop.f32.mrb[5].mxu0 }
 0x4be   : > { %v3358_v31 = vadd.f32 %v1122_v29, %v4484_v28  ;;  %v2732_v29 = vld [vmem:[%s4181_s26 + $0x38] sm:$0xff] }
 0x4bf   : > { %3540 = vtanh.f32 %v3357_v53  ;;  %v2731_v53 = vld [vmem:[%s4181_s26 + $0x30] sm:$0xff]  ;;  %s1593_s26 = sadd.s32 1, %s4154_s19  ;;  %s2760_s19 = sshll.u32 %s3859_s9, 9 }
 0x4c0   : > { %3542 = vtanh.f32 %v3358_v31  ;;  %v2994_v34 = vpop.f32.mrb[6].mxu0  ;;  %s1594_s0 = sld [smem:[#allocation3 + %s1593_s26]]  ;;  %s4777_s27 = scalar_lea.hbm %s4843_s8, %s2760_s19 }
 0x4c1   : > { %v1235_v13 = vpop.f32.mrb[7].mxu0  ;;  %s2493_s9 = scalar_lea.sflag [#allocation5], %s4141_s20 }
 0x4c2   : > { %1246 = vrot.lane.b32.xlu1 %v1235_v13, %s3881_s15  ;;  %2691 = vmatmul.mubr.msk.f32.vlgmr.msra.gmra.mrb[8].mxu1 %vm804_vm2, %v1235_v13 }
 0x4c3   : > { %2997 = vmatprep.mubr.msk.f32.mxu0 %vm804_vm2, %v1235_v13  ;;  %1328 = vmatprep.mubr.f32.mxu1 %v3880_v60 }
 0x4c4   : > { %2998 = vmatmul.mubr.msk.f32.vlgmr.msra.gmra.mrb[8].mxu0 %vm804_vm2, %v2994_v34  ;;  %3254 = vmatpush3.bf16.msra.mxu1 %v4388_v7 }
 0x4c5   : > { %3286 = vmatpush3.bf16.msra.mxu0 %v3283_v25  ;;  %3256 = vmatprep.subr.bf16.mxu1 %v4393_v10 }
 0x4c6   : > { %1248 = vrot.lane.b32.xlu1 %v2994_v34, %s3881_s15  ;;  %2692 = vmatmul.mubr.msk.f32.gmra.mrb[10].mxu1 %vm804_vm2, %v2994_v34  ;;  %v3319_v34 = vpack.c.bf16 %v2732_v29, %v2731_v53 }
 0x4c7   : > { %1334 = vmatprep.mubr.f32.mxu1 %v3880_v60  ;;  %2712 = vmatprep.subr.msk.mxu0 %vm813_vm1, %v4363_v58 }
 0x4c8   : > { %3258 = vmatpush3.bf16.msra.mxu1 %v4393_v10 }
 0x4c9   : > { %v3541_v37 = vpop.eup %3540  ;;  %3260 = vmatprep.subr.bf16.mxu1 %v4397_v14 }
 0x4ca   : > { %v3543_v42 = vpop.eup %3542  ;;  %v1150_v44 = vmul.f32 %v3541_v37, %v1146_v41 }
 0x4cb   : > { %v1149_v46 = vmul.f32 %v3543_v42, %v1145_v33 }
 0x4cc   : > { %v4504_v47 = vadd.f32 %v1150_v44, %v1142_v43  ;;  %3262 = vmatpush3.bf16.msra.mxu1 %v4397_v14 }
 0x4cd   : > { %v4507_v48 = vadd.f32 %v1149_v46, %v1141_v45  ;;  %3264 = vmatprep.subr.bf16.mxu1 %v4401_v17 }
 0x4d0   : > { %3266 = vmatpush3.bf16.msra.mxu1 %v4401_v17 }
 0x4d1   : > { %3268 = vmatprep.subr.bf16.mxu1 %v4405_v20 }
 0x4d4   : > { %3270 = vmatpush3.bf16.msra.mxu1 %v4405_v20 }
 0x4d5   : > { %3272 = vmatprep.subr.bf16.mxu1 %v4409_v23 }
 0x4d8   : > { %3274 = vmatpush3.bf16.msra.mxu1 %v4409_v23 }
 0x4d9   : > { %3276 = vmatprep.subr.bf16.mxu1 %v4413_v26 }
 0x4dc   : > { %3278 = vmatpush3.bf16.msra.mxu1 %v4413_v26 }
 0x4dd   : > { %3280 = vmatprep.subr.bf16.mxu1 %v4417_v30 }
 0x4e0   : > { %3282 = vmatpush3.bf16.msra.mxu1 %v4417_v30 }
 0x4e1   : > { %3320 = vmatprep.subr.bf16.mxu1 %v3319_v34 }
 0x534   : > { %v1247_v49 = vpop.permute.xlu1 %1246 }
 0x535   : > { %2693 = vmatmul.mubr.msk.f32.gmra.mrb[12].mxu1 %vm804_vm2, %v1247_v49  ;;  %3000 = vmatprep.mubr.msk.f32.mxu0 %vm804_vm2, %v1247_v49 }
 0x536   : > { %1340 = vmatprep.mubr.f32.mxu1 %v3880_v60 }
 0x538   : > { %v1249_v50 = vpop.permute.xlu1 %1248 }
 0x539   : > { %2694 = vmatmul.mubr.msk.f32.gmra.mrb[14].mxu1 %vm804_vm2, %v1249_v50  ;;  %3001 = vmatmul.mubr.msk.f32.gmra.mrb[10].mxu0 %vm804_vm2, %v1249_v50 }
 0x53a   : > { %3045 = vmatprep.mubr.msk.f32.mxu0 %vm713_vm0, %v4169_v4 }
 0x53d   : > { %3046 = vmatmul.mubr.msk.f32.vlgmr.msra.gmra.mrb[12].mxu0 %vm713_vm0, %v4174_v5 }
 0x53e   : > { %2713 = vmatpush1.msk.msra.mxu0 %vm813_vm1, %v4359_v57  ;;  %1760 = vmatprep.mubr.f32.mxu0 %v3880_v60 }
 0x53f   : > { %3048 = vmatprep.subr.msk.mxu0 %vm813_vm1, %v4367_v59 }
 0x595   : > { %v4533_v51 = vpop.f32.mrb[8].mxu1 }
 0x596   : > { %v1326_v6 = vpop.f32.mrb[9].mxu1 }
 0x597   : > { %v1327_v8 = vadd.f32 %v1326_v6, %v4427_v32  ;;  %v4536_v9 = vpop.f32.mrb[8].mxu0 }
 0x598   : > { %v4538_v11 = vpop.f32.mrb[9].mxu0 }
 0x599   : > { %v2704_v12 = vmul.f32 -1.442695, %v1327_v8  ;;  %v4540_v15 = vpop.f32.mrb[10].mxu1 }
 0x59a   : > { %v1332_v16 = vpop.f32.mrb[11].mxu1  ;;  %v1331_v29 = vadd.f32 %v4540_v15, %v4455_v22  ;;  %v1414_v15 = vadd.f32 %v4538_v11, %v4463_v39 }
 0x59b   : > { %3544 = vpow2.f32 %v2704_v12  ;;  %v1333_v18 = vadd.f32 %v1332_v16, %v4430_v35 }
 0x59d   : > { %v2705_v19 = vmul.f32 -1.442695, %v1333_v18 }
 0x59f   : > { %3546 = vpow2.f32 %v2705_v19 }
 0x5a5   : > { %v3545_v21 = vpop.eup %3544 }
 0x5a6   : > { %v1468_v25 = vadd.f32 1.0, %v3545_v21 }
 0x5a8   : > { %3548 = vrcp.f32 %v1468_v25 }
 0x5a9   : > { %v3547_v62 = vpop.eup %3546 }
 0x5aa   : > { %v1469_v31 = vadd.f32 1.0, %v3547_v62 }
 0x5ac   : > { %3550 = vrcp.f32 %v1469_v31  ;;  %v1325_v31 = vadd.f32 %v4533_v51, %v4457_v24  ;;  %v1419_v51 = vadd.f32 %v4536_v9, %v4461_v38 }
 0x5b2   : > { %v3549_v13 = vpop.eup %3548 }
 0x5b3   : > { %v1480_v36 = vmul.f32 %v3549_v13, %v4156_v0  ;;  %v2700_v13 = vmul.f32 -1.442695, %v1325_v31 }
 0x5b5   : > { %3035 = vmatprep.mubr.f32.mxu1 %v1480_v36 }
 0x5b6   : > { %v3551_v40 = vpop.eup %3550 }
 0x5b7   : > { %v1481_v41 = vmul.f32 %v3551_v40, %v4158_v1 }
 0x5b9   : > { %3036 = vmatmul.mubr.f32.vlgmr.msra.gmra.mrb[16].mxu1 %v1481_v41 }
 0x5ba   : > { %3322 = vmatpush3.bf16.msra.mxu1 %v3319_v34  ;;  %v2701_v34 = vmul.f32 -1.442695, %v1331_v29 }
 0x5bb   : > { %2735 = vmatprep.subr.msk.mxu1 %vm813_vm1, %v4363_v58 }
 0x608   : > { %v4549_v37 = vpop.f32.mrb[12].mxu1 }
 0x609   : > { %v1338_v33 = vpop.f32.mrb[13].mxu1 }
 0x60a   : > { %v1339_v42 = vadd.f32 %v1338_v33, %v4439_v52 }
 0x60c   : > { %v2706_v43 = vmul.f32 -1.442695, %v1339_v42  ;;  %v4552_v44 = vpop.f32.mrb[14].mxu1  ;;  %v4554_v45 = vpop.f32.mrb[10].mxu0 }
 0x60d   : > { %v1344_v46 = vpop.f32.mrb[15].mxu1  ;;  %v4556_v49 = vpop.f32.mrb[11].mxu0 }
 0x60e   : > { %3552 = vpow2.f32 %v2706_v43  ;;  %v1345_v50 = vadd.f32 %v1344_v46, %v4444_v56 }
 0x610   : > { %v2707_v6 = vmul.f32 -1.442695, %v1345_v50  ;;  %v3047_v8 = vpop.f32.mrb[12].mxu0 }
 0x611   : > { %v1673_v12 = vpop.f32.mrb[13].mxu0 }
 0x612   : > { %3554 = vpow2.f32 %v2707_v6  ;;  %1684 = vrot.lane.b32.xlu0 %v1673_v12, %s3881_s15  ;;  %2714 = vmatmul.mubr.msk.f32.vlgmr.msra.gmra.mrb[14].mxu0 %vm804_vm2, %v1673_v12 }
 0x613   : > { %1766 = vmatprep.mubr.f32.mxu0 %v3880_v60  ;;  %3049 = vmatpush3.msk.msra.mxu0 %vm813_vm1, %v4367_v59 }
 0x614   : > { %3288 = vmatprep.subr.bf16.mxu0 %v4388_v7 }
 0x616   : > { %1686 = vrot.lane.b32.xlu0 %v3047_v8, %s3881_s15  ;;  %2715 = vmatmul.mubr.msk.f32.gmra.mrb[16].mxu0 %vm804_vm2, %v3047_v8 }
 0x617   : > { %1772 = vmatprep.mubr.f32.mxu0 %v3880_v60 }
 0x618   : > { %v3553_v58 = vpop.eup %3552 }
 0x619   : > { %v1470_v16 = vadd.f32 1.0, %v3553_v58 }
 0x61b   : > { %3556 = vrcp.f32 %v1470_v16 }
 0x61c   : > { %v3555_v18 = vpop.eup %3554 }
 0x61d   : > { %v1471_v19 = vadd.f32 1.0, %v3555_v18  ;;  %v4604_v18 = vstv %s1156_s17 }
 0x61e   : > { %v1159_v29 = vmul.f32 %v4604_v18, %v4469_v54  ;;  %v1343_v54 = vadd.f32 %v4552_v44, %v4473_v61 }
 0x61f   : > { %3558 = vrcp.f32 %v1471_v19 }
 0x620   : > { %3560 = vpow2.f32 %v2701_v34  ;;  %v1158_v34 = vmul.f32 %v4604_v18, %v4471_v55 }
 0x621   : > { %3562 = vpow2.f32 %v2700_v13 }
 0x625   : > { %v3557_v21 = vpop.eup %3556 }
 0x626   : > { %v1482_v25 = vmul.f32 %v3557_v21, %v4160_v2  ;;  %v4607_v21 = vstv %s1594_s0 }
 0x628   : > { %3038 = vmatprep.mubr.f32.mxu1 %v1482_v25 }
 0x629   : > { %v3559_v62 = vpop.eup %3558 }
 0x62a   : > { %v1483_v53 = vmul.f32 %v3559_v62, %v4164_v3 }
 0x62c   : > { %3039 = vmatmul.mubr.f32.gmra.mrb[18].mxu1 %v1483_v53 }
 0x62d   : > { %3098 = vmatprep.mubr.msk.f32.mxu1 %vm713_vm0, %v4169_v4  ;;  %v3561_v4 = vpop.eup %3560 }
 0x62e   : > { %v3563_v36 = vpop.eup %3562 }
 0x62f   : > { %v1444_v40 = vadd.f32 1.0, %v3563_v36  ;;  %v1337_v36 = vadd.f32 %v4549_v37, %v4475_v63 }
 0x630   : > { %3099 = vmatmul.mubr.msk.f32.vlgmr.msra.gmra.mrb[20].mxu1 %vm713_vm0, %v4174_v5 }
 0x631   : > { %2736 = vmatpush1.msk.msra.mxu1 %vm813_vm1, %v4359_v57  ;;  %2198 = vmatprep.mubr.f32.mxu1 %v3880_v60  ;;  %v1445_v57 = vadd.f32 1.0, %v3561_v4 }
 0x632   : > { %3101 = vmatprep.subr.msk.mxu1 %vm813_vm1, %v4367_v59 }
 0x633   : > { %3564 = vrcp.f32 %v1445_v57 }
 0x634   : > { %3566 = vrcp.f32 %v1444_v40 }
 0x63d   : > { %v3565_v9 = vpop.eup %3564 }
 0x63e   : > { %v3567_v11 = vpop.eup %3566  ;;  %v1582_v50 = vsub.f32 1.0, %v3565_v9  ;;  %v1578_v58 = vmul.f32 %v3565_v9, %v4158_v1 }
 0x63f   : > { %v1577_v19 = vmul.f32 %v3567_v11, %v4156_v0 }
 0x684   : > { %v1685_v5 = vpop.permute.xlu0 %1684 }
 0x685   : > { %2716 = vmatmul.mubr.msk.f32.gmra.mrb[18].mxu0 %vm804_vm2, %v1685_v5 }
 0x686   : > { %1778 = vmatprep.mubr.f32.mxu0 %v3880_v60 }
 0x688   : > { %v1687_v41 = vpop.permute.xlu0 %1686 }
 0x689   : > { %2717 = vmatmul.mubr.msk.f32.gmra.mrb[20].mxu0 %vm804_vm2, %v1687_v41 }
 0x68a   : > { %3050 = vmatprep.mubr.msk.f32.mxu0 %vm804_vm2, %v1673_v12 }
 0x68c   : > { %v3037_v33 = vpop.f32.mrb[16].mxu1 }
 0x68d   : > { %v1570_v42 = vadd.f32 %v3037_v33, %v1419_v51  ;;  %v1550_v43 = vpop.f32.mrb[17].mxu1  ;;  %3051 = vmatmul.mubr.msk.f32.vlgmr.msra.gmra.mrb[22].mxu0 %vm804_vm2, %v3047_v8  ;;  %v1581_v8 = vsub.f32 1.0, %v3567_v11  ;;  %v2702_v33 = vmul.f32 -1.442695, %v1337_v36 }
 0x68e   : > { %v1569_v46 = vadd.f32 %v1550_v43, %v1414_v15  ;;  %3290 = vmatpush3.bf16.msra.mxu0 %v4388_v7  ;;  %3053 = vmatprep.mubr.msk.f32.mxu0 %vm804_vm2, %v1685_v5 }
 0x68f   : > { %3568 = vtanh.f32 %v1570_v42  ;;  %3292 = vmatprep.subr.bf16.mxu0 %v4393_v10 }
 0x690   : > { %3570 = vtanh.f32 %v1569_v46 }
 0x691   : > { %3054 = vmatmul.mubr.msk.f32.gmra.mrb[24].mxu0 %vm804_vm2, %v1687_v41  ;;  %v2703_v41 = vmul.f32 -1.442695, %v1343_v54 }
 0x692   : > { %3294 = vmatpush3.bf16.msra.mxu0 %v4393_v10 }
 0x693   : > { %3296 = vmatprep.subr.bf16.mxu0 %v4397_v14 }
 0x696   : > { %3298 = vmatpush3.bf16.msra.mxu0 %v4397_v14 }
 0x697   : > { %3300 = vmatprep.subr.bf16.mxu0 %v4401_v17 }
 0x699   : > { %v3569_v6 = vpop.eup %3568 }
 0x69a   : > { %v3571_v12 = vpop.eup %3570  ;;  %v1586_v16 = vmul.f32 %v3569_v6, %v1582_v50  ;;  %3302 = vmatpush3.bf16.msra.mxu0 %v4401_v17 }
 0x69b   : > { %v1585_v25 = vmul.f32 %v3571_v12, %v1581_v8  ;;  %3304 = vmatprep.subr.bf16.mxu0 %v4405_v20 }
 0x69c   : > { %v1590_v62 = vadd.f32 %v1586_v16, %v1578_v58  ;;  %v1429_v58 = vadd.f32 %v4554_v45, %v4482_v27  ;;  %v1424_v16 = vadd.f32 %v4556_v49, %v4484_v28 }
 0x69d   : > { %v1589_v53 = vadd.f32 %v1585_v25, %v1577_v19 }
 0x69e   : > { %v1597_v31 = vmul.f32 %v4607_v21, %v1590_v62  ;;  %3306 = vmatpush3.bf16.msra.mxu0 %v4405_v20 }
 0x69f   : > { %v1596_v13 = vmul.f32 %v4607_v21, %v1589_v53  ;;  %3308 = vmatprep.subr.bf16.mxu0 %v4409_v23 }
 0x6a0   : > { %v4618_v4 = vadd.f32 %v1597_v31, %v1159_v29 }
 0x6a1   : > { %v4620_v5 = vadd.f32 %v1596_v13, %v1158_v34 }
 0x6a2   : > { %3310 = vmatpush3.bf16.msra.mxu0 %v4409_v23 }
 0x6a3   : > { %3312 = vmatprep.subr.bf16.mxu0 %v4413_v26 }
 0x6a6   : > { %3314 = vmatpush3.bf16.msra.mxu0 %v4413_v26 }
 0x6a7   : > { %3316 = vmatprep.subr.bf16.mxu0 %v4417_v30 }
 0x6aa   : > { %3318 = vmatpush3.bf16.msra.mxu0 %v4417_v30 }
 0x6e5   : > { %v4629_v55 = vpop.f32.mrb[14].mxu0 }
 0x6e6   : > { %v1764_v57 = vpop.f32.mrb[15].mxu0 }
 0x6e7   : > { %v1765_v40 = vadd.f32 %v1764_v57, %v4427_v32 }
 0x6e9   : > { %v2727_v51 = vmul.f32 -1.442695, %v1765_v40  ;;  %v4634_v15 = vpop.f32.mrb[16].mxu0 }
 0x6ea   : > { %v1770_v42 = vpop.f32.mrb[17].mxu0 }
 0x6eb   : > { %3572 = vpow2.f32 %v2727_v51  ;;  %v1771_v43 = vadd.f32 %v1770_v42, %v4430_v35 }
 0x6ec   : > { %3574 = vpow2.f32 %v2703_v41 }
 0x6ed   : > { %v2728_v46 = vmul.f32 -1.442695, %v1771_v43  ;;  %3576 = vpow2.f32 %v2702_v33 }
 0x6ef   : > { %3578 = vpow2.f32 %v2728_v46 }
 0x6f5   : > { %v3573_v44 = vpop.eup %3572 }
 0x6f6   : > { %v1906_v9 = vadd.f32 1.0, %v3573_v44  ;;  %v3575_v11 = vpop.eup %3574 }
 0x6f7   : > { %v3577_v37 = vpop.eup %3576  ;;  %v1447_v6 = vadd.f32 1.0, %v3575_v11 }
 0x6f8   : > { %3580 = vrcp.f32 %v1906_v9  ;;  %v1446_v12 = vadd.f32 1.0, %v3577_v37  ;;  %v1161_v9 = vmul.f32 %v4604_v18, %v4504_v47  ;;  %v1160_v37 = vmul.f32 %v4604_v18, %v4507_v48 }
 0x6f9   : > { %v3579_v50 = vpop.eup %3578 }
 0x6fa   : > { %v1907_v8 = vadd.f32 1.0, %v3579_v50 }
 0x6fc   : > { %3582 = vrcp.f32 %v1907_v8 }
 0x6fd   : > { %3584 = vrcp.f32 %v1447_v6 }
 0x6fe   : > { %3586 = vrcp.f32 %v1446_v12 }
 0x6ff   : > { %v3040_v19 = vpop.f32.mrb[18].mxu1 }
 0x700   : > { %v1572_v25 = vadd.f32 %v3040_v19, %v1429_v58  ;;  %v1560_v62 = vpop.f32.mrb[19].mxu1 }
 0x701   : > { %v1571_v53 = vadd.f32 %v1560_v62, %v1424_v16 }
 0x702   : > { %v3581_v29 = vpop.eup %3580  ;;  %3588 = vtanh.f32 %v1572_v25 }
 0x703   : > { %3590 = vtanh.f32 %v1571_v53  ;;  %v3100_v31 = vpop.f32.mrb[20].mxu1  ;;  %v1918_v34 = vmul.f32 %v3581_v29, %v4156_v0 }
 0x704   : > { %v2111_v13 = vpop.f32.mrb[21].mxu1 }
 0x705   : > { %2122 = vrot.lane.b32.xlu1 %v2111_v13, %s3881_s15  ;;  %2737 = vmatmul.mubr.msk.f32.vlgmr.msra.gmra.mrb[22].mxu1 %vm804_vm2, %v2111_v13 }
 0x706   : > { %v3583_v45 = vpop.eup %3582  ;;  %3088 = vmatprep.mubr.f32.mxu0 %v1918_v34  ;;  %2204 = vmatprep.mubr.f32.mxu1 %v3880_v60 }
 0x707   : > { %v1919_v49 = vmul.f32 %v3583_v45, %v4158_v1  ;;  %3102 = vmatpush3.msk.msra.mxu1 %vm813_vm1, %v4367_v59  ;;  %v3585_v54 = vpop.eup %3584 }
 0x708   : > { %3324 = vmatprep.subr.bf16.mxu1 %v4388_v7  ;;  %v3587_v36 = vpop.eup %3586  ;;  %v1584_v57 = vsub.f32 1.0, %v3585_v54  ;;  %v1580_v33 = vmul.f32 %v3585_v54, %v4164_v3 }
 0x709   : > { %3089 = vmatmul.mubr.f32.vlgmr.msra.gmra.mrb[22].mxu0 %v1919_v49  ;;  %2124 = vrot.lane.b32.xlu1 %v3100_v31, %s3881_s15  ;;  %v1583_v41 = vsub.f32 1.0, %v3587_v36  ;;  %v1579_v59 = vmul.f32 %v3587_v36, %v4160_v2  ;;  %s3771_s15 = scalar_lea.vmem %s3770_s24, 1024 }
 0x70a   : > { %2738 = vmatmul.mubr.msk.f32.gmra.mrb[24].mxu1 %vm804_vm2, %v3100_v31  ;;  %p3773_p12 = scmp.lt.s32.totalorder %s3771_s15, %s3765_s14 }
 0x70b   : > { %2210 = vmatprep.mubr.f32.mxu1 %v3880_v60 }
 0x70c   : > { %v3589_v40 = vpop.eup %3588  ;;  %p3774_p6 = por %p3773_p12, %p3772_p4 }
 0x70d   : > { %v3591_v51 = vpop.eup %3590  ;;  %v1588_v42 = vmul.f32 %v3589_v40, %v1584_v57 }
 0x70e   : > { %v1587_v43 = vmul.f32 %v3591_v51, %v1583_v41  ;;  %p3775_p8 = pnand %p3774_p6, %p3768_p3 }
 0x70f   : > { %v1592_v46 = vadd.f32 %v1588_v42, %v1580_v33 }
 0x710   : > { %v1591_v44 = vadd.f32 %v1587_v43, %v1579_v59 }
 0x711   : > { %v1599_v11 = vmul.f32 %v4607_v21, %v1592_v46 }
 0x712   : > { %v1598_v50 = vmul.f32 %v4607_v21, %v1591_v44 }
 0x713   : > { %v4660_v6 = vadd.f32 %v1599_v11, %v1161_v9 }
 0x714   : > { %v4662_v8 = vadd.f32 %v1598_v50, %v1160_v37 }
 0x758   : > { %v4664_v12 = vpop.f32.mrb[18].mxu0 }
 0x759   : > { %v1776_v58 = vpop.f32.mrb[19].mxu0 }
 0x75a   : > { %v1777_v16 = vadd.f32 %v1776_v58, %v4439_v52 }
 0x75c   : > { %v2729_v19 = vmul.f32 -1.442695, %v1777_v16  ;;  %v4667_v25 = vpop.f32.mrb[20].mxu0 }
 0x75d   : > { %v1782_v47 = vpop.f32.mrb[21].mxu0 }
 0x75e   : > { %3592 = vpow2.f32 %v2729_v19  ;;  %v1783_v62 = vadd.f32 %v1782_v47, %v4444_v56 }
 0x760   : > { %v2730_v53 = vmul.f32 -1.442695, %v1783_v62 }
 0x762   : > { %3594 = vpow2.f32 %v2730_v53 }
 0x768   : > { %v3593_v48 = vpop.eup %3592 }
 0x769   : > { %v1908_v18 = vadd.f32 1.0, %v3593_v48 }
 0x76b   : > { %3596 = vrcp.f32 %v1908_v18 }
 0x76c   : > { %v3595_v21 = vpop.eup %3594 }
 0x76d   : > { %v1909_v29 = vadd.f32 1.0, %v3595_v21 }
 0x76f   : > { %3598 = vrcp.f32 %v1909_v29 }
 0x775   : > { %v3597_v34 = vpop.eup %3596 }
 0x776   : > { %v1920_v45 = vmul.f32 %v3597_v34, %v4160_v2 }
 0x777   : > { %v2123_v49 = vpop.permute.xlu1 %2122 }
 0x778   : > { %2739 = vmatmul.mubr.msk.f32.gmra.mrb[26].mxu1 %vm804_vm2, %v2123_v49  ;;  %3091 = vmatprep.mubr.f32.mxu0 %v1920_v45 }
 0x779   : > { %v3599_v54 = vpop.eup %3598  ;;  %2216 = vmatprep.mubr.f32.mxu1 %v3880_v60  ;;  %v1769_v60 = vadd.f32 %v4634_v15, %v4455_v22 }
 0x77a   : > { %v1921_v36 = vmul.f32 %v3599_v54, %v4164_v3 }
 0x77b   : > { %v2125_v57 = vpop.permute.xlu1 %2124 }
 0x77c   : > { %3092 = vmatmul.mubr.f32.gmra.mrb[24].mxu0 %v1921_v36  ;;  %2740 = vmatmul.mubr.msk.f32.gmra.mrb[28].mxu1 %vm804_vm2, %v2125_v57 }
 0x77d   : > { %3103 = vmatprep.mubr.msk.f32.mxu1 %vm804_vm2, %v2111_v13 }
 0x780   : > { %3104 = vmatmul.mubr.msk.f32.vlgmr.msra.gmra.mrb[30].mxu1 %vm804_vm2, %v3100_v31 }
 0x781   : > { %3106 = vmatprep.mubr.msk.f32.mxu1 %vm804_vm2, %v2123_v49  ;;  %3326 = vmatpush3.bf16.msra.mxu1 %v4388_v7  ;;  %v1763_v7 = vadd.f32 %v4629_v55, %v4457_v24 }
 0x782   : > { %3328 = vmatprep.subr.bf16.mxu1 %v4393_v10 }
 0x784   : > { %3107 = vmatmul.mubr.msk.f32.gmra.mrb[32].mxu1 %vm804_vm2, %v2125_v57 }
 0x785   : > { %3330 = vmatpush3.bf16.msra.mxu1 %v4393_v10  ;;  %v2724_v10 = vmul.f32 -1.442695, %v1769_v60 }
 0x786   : > { %3332 = vmatprep.subr.bf16.mxu1 %v4397_v14 }
 0x787   : > { %3600 = vpow2.f32 %v2724_v10  ;;  %v1775_v10 = vadd.f32 %v4664_v12, %v4475_v63 }
 0x789   : > { %3334 = vmatpush3.bf16.msra.mxu1 %v4397_v14  ;;  %v2723_v14 = vmul.f32 -1.442695, %v1763_v7  ;;  %v1781_v7 = vadd.f32 %v4667_v25, %v4473_v61 }
 0x78a   : > { %3336 = vmatprep.subr.bf16.mxu1 %v4401_v17 }
 0x78b   : > { %3602 = vpow2.f32 %v2723_v14  ;;  %v2725_v14 = vmul.f32 -1.442695, %v1775_v10 }
 0x78d   : > { %3338 = vmatpush3.bf16.msra.mxu1 %v4401_v17 }
 0x78e   : > { %3340 = vmatprep.subr.bf16.mxu1 %v4405_v20 }
 0x791   : > { %3342 = vmatpush3.bf16.msra.mxu1 %v4405_v20  ;;  %v3601_v17 = vpop.eup %3600 }
 0x792   : > { %3344 = vmatprep.subr.bf16.mxu1 %v4409_v23 }
 0x795   : > { %3346 = vmatpush3.bf16.msra.mxu1 %v4409_v23  ;;  %v3603_v20 = vpop.eup %3602  ;;  %v1883_v23 = vadd.f32 1.0, %v3601_v17 }
 0x796   : > { %3348 = vmatprep.subr.bf16.mxu1 %v4413_v26  ;;  %v1882_v31 = vadd.f32 1.0, %v3603_v20 }
 0x797   : > { %3604 = vrcp.f32 %v1883_v23 }
 0x798   : > { %3606 = vrcp.f32 %v1882_v31 }
 0x799   : > { %3350 = vmatpush3.bf16.msra.mxu1 %v4413_v26 }
 0x79a   : > { %3352 = vmatprep.subr.bf16.mxu1 %v4417_v30 }
 0x79d   : > { %3354 = vmatpush3.bf16.msra.mxu1 %v4417_v30 }
 0x7a1   : > { %v3605_v46 = vpop.eup %3604 }
 0x7a2   : > { %v2020_v44 = vsub.f32 1.0, %v3605_v46  ;;  %v2016_v37 = vmul.f32 %v3605_v46, %v4158_v1 }
 0x7d8   : > { %v4698_v26 = vpop.f32.mrb[22].mxu1 }
 0x7d9   : > { %v2202_v13 = vpop.f32.mrb[23].mxu1 }
 0x7da   : > { %v2203_v30 = vadd.f32 %v2202_v13, %v4427_v32  ;;  %v3607_v32 = vpop.eup %3606 }
 0x7db   : > { %v2019_v9 = vsub.f32 1.0, %v3607_v32  ;;  %v2015_v58 = vmul.f32 %v3607_v32, %v4156_v0 }
 0x7dc   : > { %v2750_v15 = vmul.f32 -1.442695, %v2203_v30  ;;  %v3090_v40 = vpop.f32.mrb[22].mxu0 }
 0x7dd   : > { %v3367_v55 = vadd.f32 %v3090_v40, %v4461_v38  ;;  %v4702_v41 = vpop.f32.mrb[24].mxu1  ;;  %v1988_v51 = vpop.f32.mrb[23].mxu0 }
 0x7de   : > { %3608 = vpow2.f32 %v2750_v15  ;;  %v3368_v33 = vadd.f32 %v1988_v51, %v4463_v39  ;;  %v2208_v42 = vpop.f32.mrb[25].mxu1 }
 0x7df   : > { %3610 = vtanh.f32 %v3367_v55  ;;  %v2209_v59 = vadd.f32 %v2208_v42, %v4430_v35  ;;  %v4709_v35 = vstv %s2032_s3 }
 0x7e0   : > { %3612 = vtanh.f32 %v3368_v33 }
 0x7e1   : > { %v2751_v43 = vmul.f32 -1.442695, %v2209_v59 }
 0x7e3   : > { %3614 = vpow2.f32 %v2751_v43 }
 0x7e8   : > { %v3609_v11 = vpop.eup %3608 }
 0x7e9   : > { %v3611_v50 = vpop.eup %3610  ;;  %v2344_v16 = vadd.f32 1.0, %v3609_v11 }
 0x7ea   : > { %v3613_v19 = vpop.eup %3612  ;;  %v2024_v47 = vmul.f32 %v3611_v50, %v2020_v44 }
 0x7eb   : > { %3616 = vrcp.f32 %v2344_v16  ;;  %v2023_v62 = vmul.f32 %v3613_v19, %v2019_v9 }
 0x7ec   : > { %v2028_v53 = vadd.f32 %v2024_v47, %v2016_v37 }
 0x7ed   : > { %v3615_v48 = vpop.eup %3614  ;;  %v2027_v18 = vadd.f32 %v2023_v62, %v2015_v58 }
 0x7ee   : > { %v2035_v21 = vmul.f32 %v4709_v35, %v2028_v53  ;;  %v2345_v29 = vadd.f32 1.0, %v3615_v48 }
 0x7ef   : > { %v2034_v34 = vmul.f32 %v4709_v35, %v2027_v18 }
 0x7f0   : > { %v4714_v45 = vadd.f32 %v2035_v21, %v4618_v4  ;;  %3618 = vrcp.f32 %v2345_v29  ;;  %v2726_v4 = vmul.f32 -1.442695, %v1781_v7 }
 0x7f1   : > { %v4717_v49 = vadd.f32 %v2034_v34, %v4620_v5 }
 0x7f2   : > { %3620 = vpow2.f32 %v2726_v4 }
 0x7f3   : > { %3622 = vpow2.f32 %v2725_v14 }
 0x7f5   : > { %v3617_v54 = vpop.eup %3616 }
 0x7f6   : > { %v2356_v36 = vmul.f32 %v3617_v54, %v4156_v0 }
 0x7f8   : > { %3141 = vmatprep.mubr.f32.mxu1 %v2356_v36 }
 0x7fa   : > { %v3619_v57 = vpop.eup %3618 }
 0x7fb   : > { %v2357_v60 = vmul.f32 %v3619_v57, %v4158_v1 }
 0x7fc   : > { %v3621_v5 = vpop.eup %3620 }
 0x7fd   : > { %3142 = vmatmul.mubr.f32.vlgmr.msra.gmra.mrb[30].mxu1 %v2357_v60  ;;  %v3623_v17 = vpop.eup %3622  ;;  %v1885_v20 = vadd.f32 1.0, %v3621_v5  ;;  %v2207_v60 = vadd.f32 %v4702_v41, %v4455_v22 }
 0x7fe   : > { %v1884_v23 = vadd.f32 1.0, %v3623_v17 }
 0x7ff   : > { %3624 = vrcp.f32 %v1885_v20 }
 0x800   : > { %3626 = vrcp.f32 %v1884_v23 }
 0x809   : > { %v3625_v43 = vpop.eup %3624 }
 0x80a   : > { %v3627_v46 = vpop.eup %3626  ;;  %v2018_v9 = vmul.f32 %v3625_v43, %v4164_v3 }
 0x80b   : > { %v2021_v32 = vsub.f32 1.0, %v3627_v46  ;;  %v2017_v37 = vmul.f32 %v3627_v46, %v4160_v2  ;;  %v2480_v46 = vld [vmem:[%s4183_s23] sm:$0xff] }
 0x84b   : > { %v4725_v31 = vpop.f32.mrb[26].mxu1 }
 0x84c   : > { %v2214_v13 = vpop.f32.mrb[27].mxu1 }
 0x84d   : > { %v2215_v30 = vadd.f32 %v2214_v13, %v4439_v52  ;;  %v2022_v52 = vsub.f32 1.0, %v3625_v43 }
 0x84f   : > { %v2752_v15 = vmul.f32 -1.442695, %v2215_v30  ;;  %v3093_v25 = vpop.f32.mrb[24].mxu0  ;;  %v4728_v40 = vpop.f32.mrb[28].mxu1 }
 0x850   : > { %v3369_v12 = vadd.f32 %v3093_v25, %v4482_v27  ;;  %v1998_v55 = vpop.f32.mrb[25].mxu0  ;;  %v2220_v51 = vpop.f32.mrb[29].mxu1 }
 0x851   : > { %3628 = vpow2.f32 %v2752_v15  ;;  %v3370_v33 = vadd.f32 %v1998_v55, %v4484_v28  ;;  %v2221_v42 = vadd.f32 %v2220_v51, %v4444_v56 }
 0x852   : > { %3630 = vtanh.f32 %v3369_v12 }
 0x853   : > { %3632 = vtanh.f32 %v3370_v33  ;;  %v2753_v59 = vmul.f32 -1.442695, %v2221_v42  ;;  %v2481_v42 = vld [vmem:[%s4183_s23 + $0x8] sm:$0xff] }
 0x855   : > { %3634 = vpow2.f32 %v2753_v59 }
 0x85b   : > { %v3629_v44 = vpop.eup %3628 }
 0x85c   : > { %v3631_v11 = vpop.eup %3630  ;;  %v2346_v50 = vadd.f32 1.0, %v3629_v44 }
 0x85d   : > { %v3633_v58 = vpop.eup %3632  ;;  %v2026_v16 = vmul.f32 %v3631_v11, %v2022_v52 }
 0x85e   : > { %3636 = vrcp.f32 %v2346_v50  ;;  %v2025_v19 = vmul.f32 %v3633_v58, %v2021_v32 }
 0x85f   : > { %v3635_v56 = vpop.eup %3634  ;;  %v2030_v47 = vadd.f32 %v2026_v16, %v2018_v9 }
 0x860   : > { %v2029_v62 = vadd.f32 %v2025_v19, %v2017_v37  ;;  %v2347_v53 = vadd.f32 1.0, %v3635_v56 }
 0x861   : > { %v2037_v48 = vmul.f32 %v4709_v35, %v2030_v47 }
 0x862   : > { %v2036_v18 = vmul.f32 %v4709_v35, %v2029_v62  ;;  %3638 = vrcp.f32 %v2347_v53  ;;  %v2201_v35 = vadd.f32 %v4698_v26, %v4457_v24 }
 0x863   : > { %v4738_v21 = vadd.f32 %v2037_v48, %v4660_v6  ;;  %v2747_v6 = vmul.f32 -1.442695, %v2207_v60 }
 0x864   : > { %v4741_v29 = vadd.f32 %v2036_v18, %v4662_v8  ;;  %v2746_v7 = vmul.f32 -1.442695, %v2201_v35  ;;  %v2482_v35 = vld [vmem:[%s4183_s23 + $0x10] sm:$0xff] }
 0x865   : > { %3640 = vpow2.f32 %v2747_v6 }
 0x866   : > { %3642 = vpow2.f32 %v2746_v7 }
 0x868   : > { %v3637_v34 = vpop.eup %3636 }
 0x869   : > { %v2358_v54 = vmul.f32 %v3637_v34, %v4160_v2 }
 0x86b   : > { %3144 = vmatprep.mubr.f32.mxu1 %v2358_v54 }
 0x86c   : > { %v3639_v36 = vpop.eup %3638 }
 0x86d   : > { %v2359_v57 = vmul.f32 %v3639_v36, %v4164_v3  ;;  %v2483_v36 = vld [vmem:[%s4183_s23 + $0x18] sm:$0xff] }
 0x86f   : > { %3145 = vmatmul.mubr.f32.gmra.mrb[32].mxu1 %v2359_v57  ;;  %v3641_v8 = vpop.eup %3640 }
 0x870   : > { %v3643_v10 = vpop.eup %3642  ;;  %v2321_v4 = vadd.f32 1.0, %v3641_v8 }
 0x871   : > { %v2320_v14 = vadd.f32 1.0, %v3643_v10 }
 0x872   : > { %3644 = vrcp.f32 %v2321_v4 }
 0x873   : > { %3646 = vrcp.f32 %v2320_v14 }
 0x87c   : > { %v3645_v24 = vpop.eup %3644 }
 0x87d   : > { %v3647_v26 = vpop.eup %3646  ;;  %v2458_v41 = vsub.f32 1.0, %v3645_v24  ;;  %v2454_v15 = vmul.f32 %v3645_v24, %v4158_v1  ;;  %v2219_v1 = vadd.f32 %v4728_v40, %v4473_v61 }
 0x87e   : > { %v2457_v13 = vsub.f32 1.0, %v3647_v26  ;;  %v2453_v25 = vmul.f32 %v3647_v26, %v4156_v0  ;;  %v2213_v0 = vadd.f32 %v4725_v31, %v4475_v63 }
 0x87f   : > { %v2749_v9 = vmul.f32 -1.442695, %v2219_v1 }
 0x880   : > { %v2748_v11 = vmul.f32 -1.442695, %v2213_v0 }
 0x8d0   : > { %v3143_v5 = vpop.f32.mrb[30].mxu1 }
 0x8d1   : > { %v3371_v17 = vadd.f32 %v3143_v5, %v4461_v38  ;;  %v2426_v20 = vpop.f32.mrb[31].mxu1 }
 0x8d2   : > { %v3372_v22 = vadd.f32 %v2426_v20, %v4463_v39  ;;  %v2471_v39 = vstv %s2470_s30 }
 0x8d3   : > { %3648 = vtanh.f32 %v3371_v17 }
 0x8d4   : > { %3650 = vtanh.f32 %v3372_v22 }
 0x8d5   : > { %3652 = vpow2.f32 %v2749_v9 }
 0x8d6   : > { %3654 = vpow2.f32 %v2748_v11 }
 0x8dd   : > { %v3649_v23 = vpop.eup %3648 }
 0x8de   : > { %v3651_v30 = vpop.eup %3650  ;;  %v2462_v38 = vmul.f32 %v3649_v23, %v2458_v41 }
 0x8df   : > { %v2461_v12 = vmul.f32 %v3651_v30, %v2457_v13  ;;  %v3653_v37 = vpop.eup %3652 }
 0x8e0   : > { %v2466_v55 = vadd.f32 %v2462_v38, %v2454_v15  ;;  %v3655_v50 = vpop.eup %3654 }
 0x8e1   : > { %v2465_v51 = vadd.f32 %v2461_v12, %v2453_v25  ;;  %v2322_v58 = vadd.f32 1.0, %v3655_v50 }
 0x8e2   : > { %v2473_v33 = vmul.f32 %v2471_v39, %v2466_v55 }
 0x8e3   : > { %v2472_v59 = vmul.f32 %v2471_v39, %v2465_v51 }
 0x8e4   : > { %v2477_v43 = vadd.f32 %v2473_v33, %v4714_v45  ;;  %v2323_v45 = vadd.f32 1.0, %v3653_v37 }
 0x8e5   : > { %v2476_v52 = vadd.f32 %v2472_v59, %v4717_v49 }
 0x8e6   : > { %v2485_v32 = vadd.f32 %v2481_v42, %v2477_v43  ;;  %3656 = vrcp.f32 %v2323_v45 }
 0x8e7   : > { %v2484_v44 = vadd.f32 %v2480_v46, %v2476_v52  ;;  %3658 = vrcp.f32 %v2322_v58 }
 0x8e8   : > { %2489 = vst [vmem:[%s4183_s23 + $0x8] sm:$0xff] %v2485_v32 }
 0x8e9   : > { %2488 = vst [vmem:[%s4183_s23] sm:$0xff] %v2484_v44 }
 0x8f0   : > { %v3657_v61 = vpop.eup %3656 }
 0x8f1   : > { %v3659_v63 = vpop.eup %3658  ;;  %v2460_v31 = vsub.f32 1.0, %v3657_v61  ;;  %v2456_v53 = vmul.f32 %v3657_v61, %v4164_v3 }
 0x8f2   : > { %v2459_v47 = vsub.f32 1.0, %v3659_v63 }
 0x942   : > { %v3146_v49 = vpop.f32.mrb[32].mxu1 }
 0x943   : > { %v3373_v16 = vadd.f32 %v3146_v49, %v4482_v27  ;;  %v2436_v19 = vpop.f32.mrb[33].mxu1  ;;  %v2455_v27 = vmul.f32 %v3659_v63, %v4160_v2 }
 0x944   : > { %v3374_v56 = vadd.f32 %v2436_v19, %v4484_v28 }
 0x945   : > { %3660 = vtanh.f32 %v3373_v16 }
 0x946   : > { %3662 = vtanh.f32 %v3374_v56 }
 0x94f   : > { %v3661_v40 = vpop.eup %3660 }
 0x950   : > { %v3663_v62 = vpop.eup %3662  ;;  %v2464_v48 = vmul.f32 %v3661_v40, %v2460_v31 }
 0x951   : > { %v2463_v18 = vmul.f32 %v3663_v62, %v2459_v47 }
 0x952   : > { %v2468_v28 = vadd.f32 %v2464_v48, %v2456_v53 }
 0x953   : > { %v2467_v34 = vadd.f32 %v2463_v18, %v2455_v27 }
 0x954   : > { %v2475_v54 = vmul.f32 %v2471_v39, %v2468_v28 }
 0x955   : > { %v2474_v57 = vmul.f32 %v2471_v39, %v2467_v34 }
 0x956   : > { %v2479_v60 = vadd.f32 %v2475_v54, %v4738_v21 }
 0x957   : > { %v2478_v3 = vadd.f32 %v2474_v57, %v4741_v29 }
 0x958   : > { %v2487_v6 = vadd.f32 %v2483_v36, %v2479_v60 }
 0x959   : > { %v2486_v2 = vadd.f32 %v2482_v35, %v2478_v3 }
 0x95a   : > { %2491 = vst [vmem:[%s4183_s23 + $0x18] sm:$0xff] %v2487_v6 }
 0x95b   : > { %2490 = vst [vmem:[%s4183_s23 + $0x10] sm:$0xff] %v2486_v2 }
 0x95c   : > { %3778 = shalt.err (!%p3775_p8)
}
 0x95d   : > { %s3779_s23 = scalar_lea.hbm %s4777_s27, 512  ;;  %s3783_s0 = scalar_lea.hbm %s4843_s8, 1024 }
 0x95e   : > { %p3780_p1 = scmp.ne.s32.totalorder %s4777_s27, %s3779_s23  ;;  %p3784_p0 = scmp.lt.u32.totalorder %s4777_s27, %s4843_s8 }
 0x95f   : > { %p3785_p9 = scmp.lt.u32.totalorder %s3783_s0, %s3779_s23  ;;  %p3787_p11 = scmp.lt.u32.totalorder %s3779_s23, %s4777_s27 }
 0x960   : > { %p3781_p2 = pnand %p3780_p1, %p4076_p7 }
 0x961   : > { %p3786_p10 = por %p3785_p9, %p3784_p0 }
 0x962   : > { %p3782_p5 = pneg %p3781_p2 }
 0x963   : > { %p3788_p13 = por %p3787_p11, %p3786_p10 }
 0x965   : > { %p3789_p3 = pnand %p3788_p13, %p3782_p5 }
 0x967   : > { %3792 = shalt.err (!%p3789_p3)
}
 0x968   : > { %s3883_s21 = smov 128   ;;  %s3884_s30 = smov 8  }
 0x969   : > { %3401 = dma.vmem_to_hbm [thread:$0]  (%p4076_p7), %s4779_s6, 512, %s4777_s27, %s2493_s9, %s3883_s21, %s3883_s21, %s3884_s30  }
 0x96a PF: > { %s4880_s19 = sld [smem:[#allocation16_spill]]  ;;  %s4881_s13 = sld [smem:[#allocation17_spill]] }
 0x96b   : > { %p3428_p4 = scmp.ge.s32.totalorder %s3871_s12, 2 }
 0x970   : > { %s2521_s18 = sand.u32 1, %s4880_s19   ;;  %p4882_p12 = scmp.ne.s32.totalorder %s4881_s13, 0 }
 0x971   : > { %s2522_s14 = scalar_lea.sflag [#allocation5], %s2521_s18 }
 0x972   : > { %p3418_p6 = pnand %p3428_p4, %p4882_p12 }
 0x974   : > { %3838 = dma.done.wait (!%p3418_p6), %s2522_s14, 512  }
 0x975   : > { %3840 = vsyncadd (!%p3418_p6), %s2522_s14, 4294966784  ;;  %s26_s12 = sadd.s32 1, %s3871_s12   ;;  %s4883_s22 = sld [smem:[#allocation18_spill]] }
 0x976   : > { %p23_p8 = scmp.ge.s32.totalorder %s26_s12, 6   ;;  %s4884_s20 = sld [smem:[#allocation19_spill]] }
 0x977   : > { %s4885_s27 = smov %s3847_s28  ;;  %s4886_s28 = smov %s3851_s29 }
 0x978   : > { %s4887_s29 = smov %s4093_s4  ;;  %s4888_s30 = smov %s3863_s10 }
 0x979   : > { %s4889_s9 = smov %s3867_s11  ;;  %25 = sbr.rel (!%p23_p8) target bundleno = 14 (0xe), region = 120 }
 0x97b   : > { %s4890_s10 = smov %s4883_s22 }
 0x97c   : > { %s4891_s11 = smov %s4884_s20 }
 0x980   :  { %2527 = vsyncpa [#allocation4], 1 }
 0x981   :  { %2529 = vsyncpa [#allocation4 + $0x1], 1 }
 0x982   :  { %2530 = vsyncpa [#allocation9], 1 }
 0x983   :  { %2531 = vsyncpa [#allocation5], 1 }
 0x984   :  { %2533 = vsyncpa [#allocation5 + $0x1], 1 }
 0x985   :  { %2534 = vsyncpa [#allocation6], 1 }
 0x986   :  { %2536 = vsyncpa [#allocation6 + $0x1], 1 }

</bundles_post_ra>
